<compile_context>
chip_gen: v7x
topology: tpu7x:2x2x1
jax: 0.10.0
libtpu: 0.0.40
codegen_flags: <defaults>
</compile_context>

<pallas_src>
import functools
import math

import jax
import jax.numpy as jnp
from jax.experimental import pallas as pl
from jax.experimental.pallas import tpu as pltpu


def _round_up(x: int, m: int) -> int:
    return ((x + m - 1) // m) * m


def _vae_kernel(x_ref, eps_ref,
                w1_ref, b1_ref,
                wml_ref, bml_ref,
                w2_ref, b2_ref,
                w3_ref, b3_ref,
                recon_ref, ml_ref,
                *, lp: int):
    """One batch tile of the VAE forward pass.  lp = padded latent width."""
    wd = w1_ref.dtype  # MXU input dtype (bf16 by default, f32 supported)

    x = x_ref[...]

    # encode: h = relu(x @ W1 + b1)     (f32 accumulate, f32 element-wise)
    h = jnp.dot(x, w1_ref[...], preferred_element_type=jnp.float32) + b1_ref[...]
    h = jnp.maximum(h, 0.0).astype(wd)

    # fused mu / log_var head: one matmul, static lane-aligned split.
    ml = jnp.dot(h, wml_ref[...], preferred_element_type=jnp.float32) + bml_ref[...]
    mu = ml[:, :lp]
    lv = ml[:, lp:]

    # reparameterize: z = mu + eps * exp(0.5 * log_var)   (all f32; eps is f32)
    std = jnp.exp(0.5 * lv)
    z = (mu + eps_ref[...] * std).astype(wd)

    # decode: recon = relu(z @ W2 + b2) @ W3 + b3
    h2 = jnp.dot(z, w2_ref[...], preferred_element_type=jnp.float32) + b2_ref[...]
    h2 = jnp.maximum(h2, 0.0).astype(wd)
    recon = jnp.dot(h2, w3_ref[...], preferred_element_type=jnp.float32) + b3_ref[...]

    recon_ref[...] = recon.astype(recon_ref.dtype)
    ml_ref[...] = ml.astype(ml_ref.dtype)  # fused mu | log_var (lane-dense)


def prepare_params(params, *, compute_dtype=jnp.bfloat16):
    """One-time padding/casting of the VAE parameters (hoisted out of the
    per-call path).  Weights are [in, out]; biases [1, out] or [out]."""
    input_dim, hidden_dim = params["w1"].shape
    latent_dim = params["w_mu"].shape[1]
    Dp = _round_up(input_dim, 128)
    Hp = _round_up(hidden_dim, 128)
    Lp = _round_up(latent_dim, 128)
    wd = compute_dtype

    def pad2(a, rows, cols, dtype):
        a = jnp.asarray(a)
        if a.ndim == 1:
            a = a.reshape(1, -1)
        out = jnp.zeros((rows, cols), dtype)
        return out.at[:a.shape[0], :a.shape[1]].set(a.astype(dtype))

    # fused mu / log_var head weights: [Hp, 2*Lp]  (biases stay f32, they are
    # added after the f32 accumulation).
    wml = jnp.zeros((Hp, 2 * Lp), wd)
    wml = wml.at[:hidden_dim, :latent_dim].set(params["w_mu"].astype(wd))
    wml = wml.at[:hidden_dim, Lp:Lp + latent_dim].set(params["w_lv"].astype(wd))
    bml = jnp.zeros((1, 2 * Lp), jnp.float32)
    bml = bml.at[:, :latent_dim].set(
        jnp.asarray(params["b_mu"]).reshape(1, -1).astype(jnp.float32))
    bml = bml.at[:, Lp:Lp + latent_dim].set(
        jnp.asarray(params["b_lv"]).reshape(1, -1).astype(jnp.float32))

    return dict(
        w1=pad2(params["w1"], Dp, Hp, wd),
        b1=pad2(params["b1"], 1, Hp, jnp.float32),
        wml=wml, bml=bml,
        w2=pad2(params["w2"], Lp, Hp, wd),
        b2=pad2(params["b2"], 1, Hp, jnp.float32),
        w3=pad2(params["w3"], Hp, Dp, wd),
        b3=pad2(params["b3"], 1, Dp, jnp.float32),
    )


def vae_forward(x, eps, prepped, *, batch_tile=None):
    """Fused VAE forward.  x: [B, input_dim], eps: [B, latent_dim] (f32 noise).
    prepped: output of prepare_params().
    Returns (x_recon [B, input_dim], mu [B, latent_dim], log_var [B, latent_dim])."""
    B, input_dim = x.shape
    latent_dim = eps.shape[1]
    Dp, Hp = prepped["w1"].shape
    Lp = prepped["wml"].shape[1] // 2
    wd = prepped["w1"].dtype

    # ---- batch tiling (core-aware, sublane-packed) ---------------------------
    sub = 16 if jnp.dtype(wd) == jnp.dtype(jnp.bfloat16) else 8
    if batch_tile is None:
        if B >= 512:
            batch_tile = 256                            # grid >= 2 automatically
        elif B >= 2 * sub:
            # split into >= 2 grid steps so v7x's second TensorCore isn't idle
            batch_tile = _round_up(-(-B // 2), sub)
        else:
            batch_tile = _round_up(max(B, 1), sub)
    TB = batch_tile
    pB = _round_up(B, TB)
    grid = (pB // TB,)

    # ---- padded activations (params are pre-padded) --------------------------
    xp = jnp.zeros((pB, Dp), wd).at[:B, :input_dim].set(x.astype(wd))
    epsp = jnp.zeros((pB, Lp), jnp.float32).at[:B, :latent_dim].set(
        eps.astype(jnp.float32))

    # ---- generation-aware VMEM budget ----------------------------------------
    isz = jnp.dtype(wd).itemsize
    weight_bytes = (Dp * Hp + Hp * 2 * Lp + Lp * Hp + Hp * Dp) * isz \
        + (Hp + 2 * Lp + Hp + Dp) * 4
    act_tile_bytes = TB * Dp * isz + TB * Lp * 4 + TB * Dp * 4 + TB * 2 * Lp * 4
    vmem_budget = 2 * weight_bytes + 3 * act_tile_bytes + (4 << 20)
    try:
        vmem_cap = int(pltpu.get_tpu_info().vmem_capacity_bytes)
    except Exception:
        vmem_cap = 64 << 20  # conservative (v7x per-TC)
    vmem_limit = int(min(max(vmem_budget, 16 << 20), int(vmem_cap * 0.8)))

    # ---- pallas_call ----------------------------------------------------------
    kernel = functools.partial(_vae_kernel, lp=Lp)
    out_shapes = (
        jax.ShapeDtypeStruct((pB, Dp), jnp.float32),       # x_recon (padded)
        jax.ShapeDtypeStruct((pB, 2 * Lp), jnp.float32),   # fused mu | log_var
    )

    def act_spec(cols):
        return pl.BlockSpec((TB, cols), lambda i: (i, 0))

    def run(single_buffer_weights):
        if single_buffer_weights:
            pm = pl.Buffered(1)  # resident blocks: no need to double-buffer

            def wspec(shape):
                return pl.BlockSpec(shape, lambda i: (0, 0), pipeline_mode=pm)
        else:
            def wspec(shape):
                return pl.BlockSpec(shape, lambda i: (0, 0))

        in_specs = [
            act_spec(Dp),                 # x tile
            act_spec(Lp),                 # eps tile (f32)
            wspec((Dp, Hp)),              # w1
            wspec((1, Hp)),               # b1
            wspec((Hp, 2 * Lp)),          # w_mu | w_lv fused
            wspec((1, 2 * Lp)),           # b_mu | b_lv fused
            wspec((Lp, Hp)),              # w2
            wspec((1, Hp)),               # b2
            wspec((Hp, Dp)),              # w3
            wspec((1, Dp)),               # b3
        ]
        out_specs = (act_spec(Dp), act_spec(2 * Lp))

        fn = pl.pallas_call(
            kernel,
            grid=grid,
            out_shape=out_shapes,
            in_specs=in_specs,
            out_specs=out_specs,
            compiler_params=pltpu.CompilerParams(
                dimension_semantics=("parallel",),   # dual-TC sharding on v7x
                vmem_limit_bytes=vmem_limit,
            ),
        )
        return fn(xp, epsp,
                  prepped["w1"], prepped["b1"],
                  prepped["wml"], prepped["bml"],
                  prepped["w2"], prepped["b2"],
                  prepped["w3"], prepped["b3"])

    try:
        recon_p, ml_p = run(single_buffer_weights=True)
    except Exception:
        # Fallback if this Pallas build rejects pipeline_mode=pl.Buffered(1).
        recon_p, ml_p = run(single_buffer_weights=False)

    recon = recon_p[:B, :input_dim]
    mu = ml_p[:B, :latent_dim]
    log_var = ml_p[:B, Lp:Lp + latent_dim]
    return recon, mu, log_var


def init_params(key, input_dim, latent_dim, hidden_dim):
    """Deterministic init mimicking nn.Linear default (uniform +-1/sqrt(fan_in)).
    Weights are [in_features, out_features]; biases [1, out_features]."""
    def linear(key, fan_in, fan_out):
        kw, kb = jax.random.split(key)
        bound = 1.0 / math.sqrt(fan_in)
        w = jax.random.uniform(kw, (fan_in, fan_out), jnp.float32, -bound, bound)
        b = jax.random.uniform(kb, (1, fan_out), jnp.float32, -bound, bound)
        return w, b

    k1, k2, k3, k4, k5 = jax.random.split(key, 5)
    w1, b1 = linear(k1, input_dim, hidden_dim)
    w_mu, b_mu = linear(k2, hidden_dim, latent_dim)
    w_lv, b_lv = linear(k3, hidden_dim, latent_dim)
    w2, b2 = linear(k4, latent_dim, hidden_dim)
    w3, b3 = linear(k5, hidden_dim, input_dim)
    return dict(w1=w1, b1=b1, w_mu=w_mu, b_mu=b_mu, w_lv=w_lv, b_lv=b_lv,
                w2=w2, b2=b2, w3=w3, b3=b3)


def vae_forward_ref(x, eps, p):
    """Pure-JAX f32 reference for correctness checking."""
    h = jax.nn.relu(x @ p["w1"] + p["b1"])
    mu = h @ p["w_mu"] + p["b_mu"]
    lv = h @ p["w_lv"] + p["b_lv"]
    z = mu + eps * jnp.exp(0.5 * lv)
    h2 = jax.nn.relu(z @ p["w2"] + p["b2"])
    recon = h2 @ p["w3"] + p["b3"]
    return recon, mu, lv


if __name__ == "__main__":
    batch = 8
    input_dim = 32
    latent_dim = 10
    hidden_dim = 64

    key = jax.random.PRNGKey(0)
    k_x, k_eps, k_params = jax.random.split(key, 3)

    x = jax.random.normal(k_x, (batch, input_dim), jnp.float32)
    eps = jax.random.normal(k_eps, (batch, latent_dim), jnp.float32)
    params = init_params(k_params, input_dim, latent_dim, hidden_dim)

    recon_r, mu_r, lv_r = vae_forward_ref(x, eps, params)

    # --- bf16 MXU path (default): relaxed tolerance vs the f32 reference -----
    prepped_bf16 = prepare_params(params)                       # bf16 weights
    recon, mu, log_var = vae_forward(x, eps, prepped_bf16)
    jax.block_until_ready((recon, mu, log_var))
    assert recon.shape == (batch, input_dim)
    assert mu.shape == (batch, latent_dim) and log_var.shape == (batch, latent_dim)
    assert jnp.allclose(recon, recon_r, atol=1e-1, rtol=5e-2)
    assert jnp.allclose(mu, mu_r, atol=5e-2, rtol=5e-2)
    assert jnp.allclose(log_var, lv_r, atol=5e-2, rtol=5e-2)

    # --- f32 path: tight tolerance vs the f32 reference ----------------------
    prepped_f32 = prepare_params(params, compute_dtype=jnp.float32)
    recon32, mu32, lv32 = vae_forward(x, eps, prepped_f32)
    jax.block_until_ready((recon32, mu32, lv32))
    assert jnp.allclose(recon32, recon_r, atol=1e-4, rtol=1e-4)
    assert jnp.allclose(mu32, mu_r, atol=1e-4, rtol=1e-4)
    assert jnp.allclose(lv32, lv_r, atol=1e-4, rtol=1e-4)

    print("KERNEL_OK")
</pallas_src>

<mosaic_0001>
module attributes {stable_mosaic.version = 11 : i64} {
  func.func @_vae_kernel(%arg0: i32, %arg1: memref<16x128xbf16, #tpu.memory_space<vmem>>, %arg2: memref<16x128xf32, #tpu.memory_space<vmem>>, %arg3: memref<128x128xbf16, #tpu.memory_space<vmem>>, %arg4: memref<1x128xf32, #tpu.memory_space<vmem>>, %arg5: memref<128x256xbf16, #tpu.memory_space<vmem>>, %arg6: memref<1x256xf32, #tpu.memory_space<vmem>>, %arg7: memref<128x128xbf16, #tpu.memory_space<vmem>>, %arg8: memref<1x128xf32, #tpu.memory_space<vmem>>, %arg9: memref<128x128xbf16, #tpu.memory_space<vmem>>, %arg10: memref<1x128xf32, #tpu.memory_space<vmem>>, %arg11: memref<16x128xf32, #tpu.memory_space<vmem>>, %arg12: memref<16x256xf32, #tpu.memory_space<vmem>>) attributes {dimension_semantics = [#tpu.dimension_semantics<parallel>], iteration_bounds = array<i64: 1>, scalar_prefetch = 0 : i64, scratch_operands = 0 : i64, tpu.core_type = #tpu.core_type<tc>, window_params = [{transform_indices = @transform_0, window_bounds = array<i64: 16, 128>}, {transform_indices = @transform_1, window_bounds = array<i64: 16, 128>}, {pipeline_mode = #tpu.pipeline_mode<synchronous>, transform_indices = @transform_2, window_bounds = array<i64: 128, 128>}, {pipeline_mode = #tpu.pipeline_mode<synchronous>, transform_indices = @transform_3, window_bounds = array<i64: 1, 128>}, {pipeline_mode = #tpu.pipeline_mode<synchronous>, transform_indices = @transform_4, window_bounds = array<i64: 128, 256>}, {pipeline_mode = #tpu.pipeline_mode<synchronous>, transform_indices = @transform_5, window_bounds = array<i64: 1, 256>}, {pipeline_mode = #tpu.pipeline_mode<synchronous>, transform_indices = @transform_6, window_bounds = array<i64: 128, 128>}, {pipeline_mode = #tpu.pipeline_mode<synchronous>, transform_indices = @transform_7, window_bounds = array<i64: 1, 128>}, {pipeline_mode = #tpu.pipeline_mode<synchronous>, transform_indices = @transform_8, window_bounds = array<i64: 128, 128>}, {pipeline_mode = #tpu.pipeline_mode<synchronous>, transform_indices = @transform_9, window_bounds = array<i64: 1, 128>}, {transform_indices = @transform_10, window_bounds = array<i64: 16, 128>}, {transform_indices = @transform_11, window_bounds = array<i64: 16, 256>}]} {
    %c0 = arith.constant 0 : index
    %c0_0 = arith.constant 0 : index
    %0 = vector.load %arg1[%c0, %c0_0] : memref<16x128xbf16, #tpu.memory_space<vmem>>, vector<16x128xbf16>
    %c0_1 = arith.constant 0 : index
    %c0_2 = arith.constant 0 : index
    %1 = vector.load %arg3[%c0_1, %c0_2] : memref<128x128xbf16, #tpu.memory_space<vmem>>, vector<128x128xbf16>
    %cst = arith.constant dense<0.000000e+00> : vector<16x128xf32>
    %2 = tpu.matmul %0, %1, %cst {dimension_numbers = #tpu.dot_dimension_numbers<[1], [0], [0], [1], [0, 0, 1, 1], [], []>} : vector<16x128xbf16>, vector<128x128xbf16>, vector<16x128xf32> -> vector<16x128xf32>
    %c0_3 = arith.constant 0 : index
    %c0_4 = arith.constant 0 : index
    %3 = vector.load %arg4[%c0_3, %c0_4] : memref<1x128xf32, #tpu.memory_space<vmem>>, vector<1x128xf32>
    %4 = vector.broadcast %3 : vector<1x128xf32> to vector<16x128xf32>
    %5 = arith.addf %2, %4 : vector<16x128xf32>
    %cst_5 = arith.constant 0.000000e+00 : f32
    %6 = vector.broadcast %cst_5 : f32 to vector<16x128xf32>
    %7 = arith.maximumf %5, %6 : vector<16x128xf32>
    %8 = arith.truncf %7 : vector<16x128xf32> to vector<16x128xbf16>
    %c0_6 = arith.constant 0 : index
    %c0_7 = arith.constant 0 : index
    %9 = vector.load %arg5[%c0_6, %c0_7] : memref<128x256xbf16, #tpu.memory_space<vmem>>, vector<128x256xbf16>
    %cst_8 = arith.constant dense<0.000000e+00> : vector<16x256xf32>
    %10 = tpu.matmul %8, %9, %cst_8 {dimension_numbers = #tpu.dot_dimension_numbers<[1], [0], [0], [1], [0, 0, 1, 1], [], []>} : vector<16x128xbf16>, vector<128x256xbf16>, vector<16x256xf32> -> vector<16x256xf32>
    %c0_9 = arith.constant 0 : index
    %c0_10 = arith.constant 0 : index
    %11 = vector.load %arg6[%c0_9, %c0_10] : memref<1x256xf32, #tpu.memory_space<vmem>>, vector<1x256xf32>
    %12 = vector.broadcast %11 : vector<1x256xf32> to vector<16x256xf32>
    %13 = arith.addf %10, %12 : vector<16x256xf32>
    %14 = vector.extract_strided_slice %13 {offsets = [0, 0], sizes = [16, 128], strides = [1, 1]} : vector<16x256xf32> to vector<16x128xf32>
    %15 = vector.extract_strided_slice %13 {offsets = [0, 128], sizes = [16, 128], strides = [1, 1]} : vector<16x256xf32> to vector<16x128xf32>
    %cst_11 = arith.constant 5.000000e-01 : f32
    %16 = vector.broadcast %cst_11 : f32 to vector<16x128xf32>
    %17 = arith.mulf %16, %15 : vector<16x128xf32>
    %18 = math.exp %17 : vector<16x128xf32>
    %c0_12 = arith.constant 0 : index
    %c0_13 = arith.constant 0 : index
    %19 = vector.load %arg2[%c0_12, %c0_13] : memref<16x128xf32, #tpu.memory_space<vmem>>, vector<16x128xf32>
    %20 = arith.mulf %19, %18 : vector<16x128xf32>
    %21 = arith.addf %14, %20 : vector<16x128xf32>
    %22 = arith.truncf %21 : vector<16x128xf32> to vector<16x128xbf16>
    %c0_14 = arith.constant 0 : index
    %c0_15 = arith.constant 0 : index
    %23 = vector.load %arg7[%c0_14, %c0_15] : memref<128x128xbf16, #tpu.memory_space<vmem>>, vector<128x128xbf16>
    %cst_16 = arith.constant dense<0.000000e+00> : vector<16x128xf32>
    %24 = tpu.matmul %22, %23, %cst_16 {dimension_numbers = #tpu.dot_dimension_numbers<[1], [0], [0], [1], [0, 0, 1, 1], [], []>} : vector<16x128xbf16>, vector<128x128xbf16>, vector<16x128xf32> -> vector<16x128xf32>
    %c0_17 = arith.constant 0 : index
    %c0_18 = arith.constant 0 : index
    %25 = vector.load %arg8[%c0_17, %c0_18] : memref<1x128xf32, #tpu.memory_space<vmem>>, vector<1x128xf32>
    %26 = vector.broadcast %25 : vector<1x128xf32> to vector<16x128xf32>
    %27 = arith.addf %24, %26 : vector<16x128xf32>
    %cst_19 = arith.constant 0.000000e+00 : f32
    %28 = vector.broadcast %cst_19 : f32 to vector<16x128xf32>
    %29 = arith.maximumf %27, %28 : vector<16x128xf32>
    %30 = arith.truncf %29 : vector<16x128xf32> to vector<16x128xbf16>
    %c0_20 = arith.constant 0 : index
    %c0_21 = arith.constant 0 : index
    %31 = vector.load %arg9[%c0_20, %c0_21] : memref<128x128xbf16, #tpu.memory_space<vmem>>, vector<128x128xbf16>
    %cst_22 = arith.constant dense<0.000000e+00> : vector<16x128xf32>
    %32 = tpu.matmul %30, %31, %cst_22 {dimension_numbers = #tpu.dot_dimension_numbers<[1], [0], [0], [1], [0, 0, 1, 1], [], []>} : vector<16x128xbf16>, vector<128x128xbf16>, vector<16x128xf32> -> vector<16x128xf32>
    %c0_23 = arith.constant 0 : index
    %c0_24 = arith.constant 0 : index
    %33 = vector.load %arg10[%c0_23, %c0_24] : memref<1x128xf32, #tpu.memory_space<vmem>>, vector<1x128xf32>
    %34 = vector.broadcast %33 : vector<1x128xf32> to vector<16x128xf32>
    %35 = arith.addf %32, %34 : vector<16x128xf32>
    %c0_25 = arith.constant 0 : index
    %c0_26 = arith.constant 0 : index
    %36 = vector.load %arg11[%c0_25, %c0_26] : memref<16x128xf32, #tpu.memory_space<vmem>>, vector<16x128xf32>
    tpu.vector_store %arg11[%c0_25, %c0_26], %35 {strides = array<i32>} : memref<16x128xf32, #tpu.memory_space<vmem>>, vector<16x128xf32>,
    %c0_27 = arith.constant 0 : index
    %c0_28 = arith.constant 0 : index
    %37 = vector.load %arg12[%c0_27, %c0_28] : memref<16x256xf32, #tpu.memory_space<vmem>>, vector<16x256xf32>
    tpu.vector_store %arg12[%c0_27, %c0_28], %13 {strides = array<i32>} : memref<16x256xf32, #tpu.memory_space<vmem>>, vector<16x256xf32>,
    return
  }
  func.func @transform_0(%arg0: i32) -> (i32, i32) {
    %c0_i32 = arith.constant 0 : i32
    %c0_i32_0 = arith.constant 0 : i32
    return %arg0, %c0_i32 : i32, i32
  }
  func.func @transform_1(%arg0: i32) -> (i32, i32) {
    %c0_i32 = arith.constant 0 : i32
    %c0_i32_0 = arith.constant 0 : i32
    return %arg0, %c0_i32 : i32, i32
  }
  func.func @transform_2(%arg0: i32) -> (i32, i32) {
    %c0_i32 = arith.constant 0 : i32
    %c0_i32_0 = arith.constant 0 : i32
    %c0_i32_1 = arith.constant 0 : i32
    return %c0_i32, %c0_i32_0 : i32, i32
  }
  func.func @transform_3(%arg0: i32) -> (i32, i32) {
    %c0_i32 = arith.constant 0 : i32
    %c0_i32_0 = arith.constant 0 : i32
    %c0_i32_1 = arith.constant 0 : i32
    return %c0_i32, %c0_i32_0 : i32, i32
  }
  func.func @transform_4(%arg0: i32) -> (i32, i32) {
    %c0_i32 = arith.constant 0 : i32
    %c0_i32_0 = arith.constant 0 : i32
    %c0_i32_1 = arith.constant 0 : i32
    return %c0_i32, %c0_i32_0 : i32, i32
  }
  func.func @transform_5(%arg0: i32) -> (i32, i32) {
    %c0_i32 = arith.constant 0 : i32
    %c0_i32_0 = arith.constant 0 : i32
    %c0_i32_1 = arith.constant 0 : i32
    return %c0_i32, %c0_i32_0 : i32, i32
  }
  func.func @transform_6(%arg0: i32) -> (i32, i32) {
    %c0_i32 = arith.constant 0 : i32
    %c0_i32_0 = arith.constant 0 : i32
    %c0_i32_1 = arith.constant 0 : i32
    return %c0_i32, %c0_i32_0 : i32, i32
  }
  func.func @transform_7(%arg0: i32) -> (i32, i32) {
    %c0_i32 = arith.constant 0 : i32
    %c0_i32_0 = arith.constant 0 : i32
    %c0_i32_1 = arith.constant 0 : i32
    return %c0_i32, %c0_i32_0 : i32, i32
  }
  func.func @transform_8(%arg0: i32) -> (i32, i32) {
    %c0_i32 = arith.constant 0 : i32
    %c0_i32_0 = arith.constant 0 : i32
    %c0_i32_1 = arith.constant 0 : i32
    return %c0_i32, %c0_i32_0 : i32, i32
  }
  func.func @transform_9(%arg0: i32) -> (i32, i32) {
    %c0_i32 = arith.constant 0 : i32
    %c0_i32_0 = arith.constant 0 : i32
    %c0_i32_1 = arith.constant 0 : i32
    return %c0_i32, %c0_i32_0 : i32, i32
  }
  func.func @transform_10(%arg0: i32) -> (i32, i32) {
    %c0_i32 = arith.constant 0 : i32
    %c0_i32_0 = arith.constant 0 : i32
    return %arg0, %c0_i32 : i32, i32
  }
  func.func @transform_11(%arg0: i32) -> (i32, i32) {
    %c0_i32 = arith.constant 0 : i32
    %c0_i32_0 = arith.constant 0 : i32
    return %arg0, %c0_i32 : i32, i32
  }
}

module attributes {stable_mosaic.version = 11 : i64} {
  func.func @_vae_kernel(%arg0: i32, %arg1: memref<16x128xbf16, #tpu.memory_space<vmem>>, %arg2: memref<16x128xf32, #tpu.memory_space<vmem>>, %arg3: memref<128x128xbf16, #tpu.memory_space<vmem>>, %arg4: memref<1x128xf32, #tpu.memory_space<vmem>>, %arg5: memref<128x256xbf16, #tpu.memory_space<vmem>>, %arg6: memref<1x256xf32, #tpu.memory_space<vmem>>, %arg7: memref<128x128xbf16, #tpu.memory_space<vmem>>, %arg8: memref<1x128xf32, #tpu.memory_space<vmem>>, %arg9: memref<128x128xbf16, #tpu.memory_space<vmem>>, %arg10: memref<1x128xf32, #tpu.memory_space<vmem>>, %arg11: memref<16x128xf32, #tpu.memory_space<vmem>>, %arg12: memref<16x256xf32, #tpu.memory_space<vmem>>) attributes {dimension_semantics = [#tpu.dimension_semantics<parallel>], iteration_bounds = array<i64: 1>, scalar_prefetch = 0 : i64, scratch_operands = 0 : i64, tpu.core_type = #tpu.core_type<tc>, window_params = [{transform_indices = @transform_0, window_bounds = array<i64: 16, 128>}, {transform_indices = @transform_1, window_bounds = array<i64: 16, 128>}, {pipeline_mode = #tpu.pipeline_mode<synchronous>, transform_indices = @transform_2, window_bounds = array<i64: 128, 128>}, {pipeline_mode = #tpu.pipeline_mode<synchronous>, transform_indices = @transform_3, window_bounds = array<i64: 1, 128>}, {pipeline_mode = #tpu.pipeline_mode<synchronous>, transform_indices = @transform_4, window_bounds = array<i64: 128, 256>}, {pipeline_mode = #tpu.pipeline_mode<synchronous>, transform_indices = @transform_5, window_bounds = array<i64: 1, 256>}, {pipeline_mode = #tpu.pipeline_mode<synchronous>, transform_indices = @transform_6, window_bounds = array<i64: 128, 128>}, {pipeline_mode = #tpu.pipeline_mode<synchronous>, transform_indices = @transform_7, window_bounds = array<i64: 1, 128>}, {pipeline_mode = #tpu.pipeline_mode<synchronous>, transform_indices = @transform_8, window_bounds = array<i64: 128, 128>}, {pipeline_mode = #tpu.pipeline_mode<synchronous>, transform_indices = @transform_9, window_bounds = array<i64: 1, 128>}, {transform_indices = @transform_10, window_bounds = array<i64: 16, 128>}, {transform_indices = @transform_11, window_bounds = array<i64: 16, 256>}]} {
    %c0 = arith.constant 0 : index
    %c0_0 = arith.constant 0 : index
    %0 = vector.load %arg1[%c0, %c0_0] : memref<16x128xbf16, #tpu.memory_space<vmem>>, vector<16x128xbf16>
    %c0_1 = arith.constant 0 : index
    %c0_2 = arith.constant 0 : index
    %1 = vector.load %arg3[%c0_1, %c0_2] : memref<128x128xbf16, #tpu.memory_space<vmem>>, vector<128x128xbf16>
    %cst = arith.constant dense<0.000000e+00> : vector<16x128xf32>
    %2 = tpu.matmul %0, %1, %cst {dimension_numbers = #tpu.dot_dimension_numbers<[1], [0], [0], [1], [0, 0, 1, 1], [], []>} : vector<16x128xbf16>, vector<128x128xbf16>, vector<16x128xf32> -> vector<16x128xf32>
    %c0_3 = arith.constant 0 : index
    %c0_4 = arith.constant 0 : index
    %3 = vector.load %arg4[%c0_3, %c0_4] : memref<1x128xf32, #tpu.memory_space<vmem>>, vector<1x128xf32>
    %4 = vector.broadcast %3 : vector<1x128xf32> to vector<16x128xf32>
    %5 = arith.addf %2, %4 : vector<16x128xf32>
    %cst_5 = arith.constant 0.000000e+00 : f32
    %6 = vector.broadcast %cst_5 : f32 to vector<16x128xf32>
    %7 = arith.maximumf %5, %6 : vector<16x128xf32>
    %8 = arith.truncf %7 : vector<16x128xf32> to vector<16x128xbf16>
    %c0_6 = arith.constant 0 : index
    %c0_7 = arith.constant 0 : index
    %9 = vector.load %arg5[%c0_6, %c0_7] : memref<128x256xbf16, #tpu.memory_space<vmem>>, vector<128x256xbf16>
    %cst_8 = arith.constant dense<0.000000e+00> : vector<16x256xf32>
    %10 = tpu.matmul %8, %9, %cst_8 {dimension_numbers = #tpu.dot_dimension_numbers<[1], [0], [0], [1], [0, 0, 1, 1], [], []>} : vector<16x128xbf16>, vector<128x256xbf16>, vector<16x256xf32> -> vector<16x256xf32>
    %c0_9 = arith.constant 0 : index
    %c0_10 = arith.constant 0 : index
    %11 = vector.load %arg6[%c0_9, %c0_10] : memref<1x256xf32, #tpu.memory_space<vmem>>, vector<1x256xf32>
    %12 = vector.broadcast %11 : vector<1x256xf32> to vector<16x256xf32>
    %13 = arith.addf %10, %12 : vector<16x256xf32>
    %14 = vector.extract_strided_slice %13 {offsets = [0, 0], sizes = [16, 128], strides = [1, 1]} : vector<16x256xf32> to vector<16x128xf32>
    %15 = vector.extract_strided_slice %13 {offsets = [0, 128], sizes = [16, 128], strides = [1, 1]} : vector<16x256xf32> to vector<16x128xf32>
    %cst_11 = arith.constant 5.000000e-01 : f32
    %16 = vector.broadcast %cst_11 : f32 to vector<16x128xf32>
    %17 = arith.mulf %16, %15 : vector<16x128xf32>
    %18 = math.exp %17 : vector<16x128xf32>
    %c0_12 = arith.constant 0 : index
    %c0_13 = arith.constant 0 : index
    %19 = vector.load %arg2[%c0_12, %c0_13] : memref<16x128xf32, #tpu.memory_space<vmem>>, vector<16x128xf32>
    %20 = arith.mulf %19, %18 : vector<16x128xf32>
    %21 = arith.addf %14, %20 : vector<16x128xf32>
    %22 = arith.truncf %21 : vector<16x128xf32> to vector<16x128xbf16>
    %c0_14 = arith.constant 0 : index
    %c0_15 = arith.constant 0 : index
    %23 = vector.load %arg7[%c0_14, %c0_15] : memref<128x128xbf16, #tpu.memory_space<vmem>>, vector<128x128xbf16>
    %cst_16 = arith.constant dense<0.000000e+00> : vector<16x128xf32>
    %24 = tpu.matmul %22, %23, %cst_16 {dimension_numbers = #tpu.dot_dimension_numbers<[1], [0], [0], [1], [0, 0, 1, 1], [], []>} : vector<16x128xbf16>, vector<128x128xbf16>, vector<16x128xf32> -> vector<16x128xf32>
    %c0_17 = arith.constant 0 : index
    %c0_18 = arith.constant 0 : index
    %25 = vector.load %arg8[%c0_17, %c0_18] : memref<1x128xf32, #tpu.memory_space<vmem>>, vector<1x128xf32>
    %26 = vector.broadcast %25 : vector<1x128xf32> to vector<16x128xf32>
    %27 = arith.addf %24, %26 : vector<16x128xf32>
    %cst_19 = arith.constant 0.000000e+00 : f32
    %28 = vector.broadcast %cst_19 : f32 to vector<16x128xf32>
    %29 = arith.maximumf %27, %28 : vector<16x128xf32>
    %30 = arith.truncf %29 : vector<16x128xf32> to vector<16x128xbf16>
    %c0_20 = arith.constant 0 : index
    %c0_21 = arith.constant 0 : index
    %31 = vector.load %arg9[%c0_20, %c0_21] : memref<128x128xbf16, #tpu.memory_space<vmem>>, vector<128x128xbf16>
    %cst_22 = arith.constant dense<0.000000e+00> : vector<16x128xf32>
    %32 = tpu.matmul %30, %31, %cst_22 {dimension_numbers = #tpu.dot_dimension_numbers<[1], [0], [0], [1], [0, 0, 1, 1], [], []>} : vector<16x128xbf16>, vector<128x128xbf16>, vector<16x128xf32> -> vector<16x128xf32>
    %c0_23 = arith.constant 0 : index
    %c0_24 = arith.constant 0 : index
    %33 = vector.load %arg10[%c0_23, %c0_24] : memref<1x128xf32, #tpu.memory_space<vmem>>, vector<1x128xf32>
    %34 = vector.broadcast %33 : vector<1x128xf32> to vector<16x128xf32>
    %35 = arith.addf %32, %34 : vector<16x128xf32>
    %c0_25 = arith.constant 0 : index
    %c0_26 = arith.constant 0 : index
    %36 = vector.load %arg11[%c0_25, %c0_26] : memref<16x128xf32, #tpu.memory_space<vmem>>, vector<16x128xf32>
    tpu.vector_store %arg11[%c0_25, %c0_26], %35 {strides = array<i32>} : memref<16x128xf32, #tpu.memory_space<vmem>>, vector<16x128xf32>,
    %c0_27 = arith.constant 0 : index
    %c0_28 = arith.constant 0 : index
    %37 = vector.load %arg12[%c0_27, %c0_28] : memref<16x256xf32, #tpu.memory_space<vmem>>, vector<16x256xf32>
    tpu.vector_store %arg12[%c0_27, %c0_28], %13 {strides = array<i32>} : memref<16x256xf32, #tpu.memory_space<vmem>>, vector<16x256xf32>,
    return
  }
  func.func @transform_0(%arg0: i32) -> (i32, i32) {
    %c0_i32 = arith.constant 0 : i32
    %c0_i32_0 = arith.constant 0 : i32
    return %arg0, %c0_i32 : i32, i32
  }
  func.func @transform_1(%arg0: i32) -> (i32, i32) {
    %c0_i32 = arith.constant 0 : i32
    %c0_i32_0 = arith.constant 0 : i32
    return %arg0, %c0_i32 : i32, i32
  }
  func.func @transform_2(%arg0: i32) -> (i32, i32) {
    %c0_i32 = arith.constant 0 : i32
    %c0_i32_0 = arith.constant 0 : i32
    %c0_i32_1 = arith.constant 0 : i32
    return %c0_i32, %c0_i32_0 : i32, i32
  }
  func.func @transform_3(%arg0: i32) -> (i32, i32) {
    %c0_i32 = arith.constant 0 : i32
    %c0_i32_0 = arith.constant 0 : i32
    %c0_i32_1 = arith.constant 0 : i32
    return %c0_i32, %c0_i32_0 : i32, i32
  }
  func.func @transform_4(%arg0: i32) -> (i32, i32) {
    %c0_i32 = arith.constant 0 : i32
    %c0_i32_0 = arith.constant 0 : i32
    %c0_i32_1 = arith.constant 0 : i32
    return %c0_i32, %c0_i32_0 : i32, i32
  }
  func.func @transform_5(%arg0: i32) -> (i32, i32) {
    %c0_i32 = arith.constant 0 : i32
    %c0_i32_0 = arith.constant 0 : i32
    %c0_i32_1 = arith.constant 0 : i32
    return %c0_i32, %c0_i32_0 : i32, i32
  }
  func.func @transform_6(%arg0: i32) -> (i32, i32) {
    %c0_i32 = arith.constant 0 : i32
    %c0_i32_0 = arith.constant 0 : i32
    %c0_i32_1 = arith.constant 0 : i32
    return %c0_i32, %c0_i32_0 : i32, i32
  }
  func.func @transform_7(%arg0: i32) -> (i32, i32) {
    %c0_i32 = arith.constant 0 : i32
    %c0_i32_0 = arith.constant 0 : i32
    %c0_i32_1 = arith.constant 0 : i32
    return %c0_i32, %c0_i32_0 : i32, i32
  }
  func.func @transform_8(%arg0: i32) -> (i32, i32) {
    %c0_i32 = arith.constant 0 : i32
    %c0_i32_0 = arith.constant 0 : i32
    %c0_i32_1 = arith.constant 0 : i32
    return %c0_i32, %c0_i32_0 : i32, i32
  }
  func.func @transform_9(%arg0: i32) -> (i32, i32) {
    %c0_i32 = arith.constant 0 : i32
    %c0_i32_0 = arith.constant 0 : i32
    %c0_i32_1 = arith.constant 0 : i32
    return %c0_i32, %c0_i32_0 : i32, i32
  }
  func.func @transform_10(%arg0: i32) -> (i32, i32) {
    %c0_i32 = arith.constant 0 : i32
    %c0_i32_0 = arith.constant 0 : i32
    return %arg0, %c0_i32 : i32, i32
  }
  func.func @transform_11(%arg0: i32) -> (i32, i32) {
    %c0_i32 = arith.constant 0 : i32
    %c0_i32_0 = arith.constant 0 : i32
    return %arg0, %c0_i32 : i32, i32
  }
}

</mosaic_0001>

<bundles_post_ra>
// kernel: tpu_custom_call.1
= control target key start
LH: loop header
LB: loop body
LE: loop exit
PB: predicated region body
PF: predicated region fallthrough
CT: control target
= control target key end

     0   :  { %17 = vsyncpa [#allocation3], 0  ;;  %s1303_s0 = inlined_call_operand.hbm [shape: bf16[16,128], index: 0, kind: input, shape index: {}]   ;;  %s1304_s1 = inlined_call_operand.hbm [shape: f32[16,128], index: 1, kind: input, shape index: {}]   ;;  %s1305_s2 = inlined_call_operand.hbm [shape: bf16[128,128], index: 2, kind: input, shape index: {}]   ;;  %s1306_s3 = inlined_call_operand.vmem [shape: f32[1,128], index: 3, kind: input, shape index: {}]   ;;  %s1307_s4 = inlined_call_operand.hbm [shape: bf16[128,256], index: 4, kind: input, shape index: {}]   ;;  %s1308_s5 = inlined_call_operand.vmem [shape: f32[1,256], index: 5, kind: input, shape index: {}]   ;;  %s1309_s6 = inlined_call_operand.hbm [shape: bf16[128,128], index: 6, kind: input, shape index: {}]   ;;  %s1310_s7 = inlined_call_operand.vmem [shape: f32[1,128], index: 7, kind: input, shape index: {}]   ;;  %s1311_s8 = inlined_call_operand.hbm [shape: bf16[128,128], index: 8, kind: input, shape index: {}]   ;;  %s1312_s9 = inlined_call_operand.vmem [shape: f32[1,128], index: 9, kind: input, shape index: {}]   ;;  %s1313_s10 = inlined_call_operand.hbm [shape: f32[16,128], index: 10, kind: output, shape index: {0}]   ;;  %s1314_s11 = inlined_call_operand.hbm [shape: f32[16,256], index: 11, kind: output, shape index: {1}]  }
   0x1   :  { %18 = vsyncpa [#allocation6], 0 }
   0x2   :  { %19 = vsyncpa [#allocation9], 0 }
   0x3   :  { %20 = vsyncpa [#allocation12], 0 }
   0x4   :  { %21 = vsyncpa [#allocation4], 0 }
   0x5   :  { %22 = vsyncpa [#allocation15], 0  ;;  %s1067_s17 = smov [#allocation5]   ;;  %s879_s21 = scalar_lea.hbm %s1304_s1, 256 }
   0x6   :  { %s40_s18 = sshll.u32 %s1067_s17, 4  ;;  %p880_p0 = scmp.ne.s32.totalorder %s1304_s1, %s879_s21  ;;  %s41_s18 = int_to_ptr.vmem [resolvable:$true] %s40_s18 }
   0x7   :  { %p883_p1 = scmp.lt.u32.totalorder %s879_s21, %s1304_s1 }
   0x9   :  { %p885_p2 = pnand %p883_p1, %p880_p0 }
   0xb   :  { %888 = shalt.err (!%p885_p2)
}
   0xc   :  { %s889_s26 = scalar_lea.vmem %s41_s18, 256  ;;  %p894_p4 = scmp.lt.s32.totalorder %s41_s18, %s41_s18 }
   0xd   :  { %p890_p3 = scmp.ne.s32.totalorder %s41_s18, %s889_s26  ;;  %p895_p5 = scmp.lt.s32.totalorder %s889_s26, %s889_s26 }
   0xf   :  { %p896_p6 = por %p895_p5, %p894_p4 }
  0x11   :  { %p897_p7 = pnand %p896_p6, %p890_p3 }
  0x13   :  { %900 = shalt.err (!%p897_p7)
}
  0x14   :  { %s1068_s27 = smov 128   ;;  %s1069_s28 = smov 8  }
  0x15   :  { %46 = dma.hbm_to_vmem [thread:$0]  %s1304_s1, 256, %s41_s18, [#allocation6], %s1068_s27, %s1068_s27, %s1069_s28  }
  0x16   :  { %s1070_s12 = smov [#allocation8]   ;;  %s1071_s14 = smov [#allocation2]  }
  0x17   :  { %s66_s13 = sshll.u32 %s1070_s12, 4  ;;  %s28_s15 = sshll.u32 %s1071_s14, 4  ;;  %s67_s13 = int_to_ptr.vmem [resolvable:$true] %s66_s13  ;;  %s29_s15 = int_to_ptr.vmem [resolvable:$true] %s28_s15 }
  0x18   :  { %s901_s19 = scalar_lea.hbm %s1307_s4, 2048 }
  0x19   :  { %p902_p8 = scmp.ne.s32.totalorder %s1307_s4, %s901_s19  ;;  %p905_p9 = scmp.lt.u32.totalorder %s901_s19, %s1307_s4 }
  0x1b   :  { %p907_p10 = pnand %p905_p9, %p902_p8 }
  0x1d   :  { %910 = shalt.err (!%p907_p10)
}
  0x1e   :  { %s911_s1 = scalar_lea.vmem %s67_s13, 2048  ;;  %p916_p12 = scmp.lt.s32.totalorder %s67_s13, %s67_s13 }
  0x1f   :  { %p912_p11 = scmp.ne.s32.totalorder %s67_s13, %s911_s1  ;;  %p917_p13 = scmp.lt.s32.totalorder %s911_s1, %s911_s1 }
  0x21   :  { %p918_p0 = por %p917_p13, %p916_p12 }
  0x23   :  { %p919_p1 = pnand %p918_p0, %p912_p11 }
  0x25   :  { %922 = shalt.err (!%p919_p1)
}
  0x26   :  { %72 = dma.hbm_to_vmem [thread:$0]  %s1307_s4, 2048, %s67_s13, [#allocation9], %s1068_s27, %s1068_s27, %s1069_s28  }
  0x27   :  { %s923_s29 = scalar_lea.hbm %s1303_s0, 128 }
  0x28   :  { %p924_p2 = scmp.ne.s32.totalorder %s1303_s0, %s923_s29  ;;  %p927_p3 = scmp.lt.u32.totalorder %s923_s29, %s1303_s0 }
  0x2a   :  { %p929_p4 = pnand %p927_p3, %p924_p2 }
  0x2c   :  { %932 = shalt.err (!%p929_p4)
}
  0x2d   :  { %s933_s17 = scalar_lea.vmem %s29_s15, 128  ;;  %p938_p6 = scmp.lt.s32.totalorder %s29_s15, %s29_s15 }
  0x2e   :  { %p934_p5 = scmp.ne.s32.totalorder %s29_s15, %s933_s17  ;;  %p939_p7 = scmp.lt.s32.totalorder %s933_s17, %s933_s17 }
  0x30   :  { %p940_p8 = por %p939_p7, %p938_p6 }
  0x32   :  { %p941_p9 = pnand %p940_p8, %p934_p5 }
  0x34   :  { %944 = shalt.err (!%p941_p9)
}
  0x35   :  { %s1072_s4 = smov 64   ;;  %s1073_s13 = smov 4  }
  0x36   :  { %34 = dma.hbm_to_vmem [thread:$0]  %s1303_s0, 128, %s29_s15, [#allocation3], %s1072_s4, %s1072_s4, %s1073_s13  }
  0x37   :  { %s1074_s21 = smov [#allocation7]   ;;  %s1075_s23 = smov [#allocation10]  }
  0x38   :  { %s52_s22 = sshll.u32 %s1074_s21, 4  ;;  %s80_s1 = sshll.u32 %s1075_s23, 4  ;;  %s53_s22 = int_to_ptr.vmem [resolvable:$true] %s52_s22  ;;  %s81_s1 = int_to_ptr.vmem [resolvable:$true] %s80_s1 }
  0x39   :  { %s945_s25 = scalar_lea.hbm %s1305_s2, 1024 }
  0x3a   :  { %p946_p10 = scmp.ne.s32.totalorder %s1305_s2, %s945_s25  ;;  %p949_p11 = scmp.lt.u32.totalorder %s945_s25, %s1305_s2 }
  0x3c   :  { %p951_p12 = pnand %p949_p11, %p946_p10 }
  0x3e   :  { %954 = shalt.err (!%p951_p12)
}
  0x3f   :  { %s955_s0 = scalar_lea.vmem %s53_s22, 1024  ;;  %p960_p0 = scmp.lt.s32.totalorder %s53_s22, %s53_s22 }
  0x40   :  { %p956_p13 = scmp.ne.s32.totalorder %s53_s22, %s955_s0  ;;  %p961_p1 = scmp.lt.s32.totalorder %s955_s0, %s955_s0 }
  0x42   :  { %p962_p2 = por %p961_p1, %p960_p0 }
  0x44   :  { %p963_p3 = pnand %p962_p2, %p956_p13 }
  0x46   :  { %966 = shalt.err (!%p963_p3)
}
  0x47   :  { %58 = dma.hbm_to_vmem [thread:$0]  %s1305_s2, 1024, %s53_s22, [#allocation6], %s1072_s4, %s1072_s4, %s1073_s13  }
  0x48   :  { %s967_s19 = scalar_lea.hbm %s1309_s6, 1024 }
  0x49   :  { %p968_p4 = scmp.ne.s32.totalorder %s1309_s6, %s967_s19  ;;  %p971_p5 = scmp.lt.u32.totalorder %s967_s19, %s1309_s6 }
  0x4b   :  { %p973_p6 = pnand %p971_p5, %p968_p4 }
  0x4d   :  { %976 = shalt.err (!%p973_p6)
}
  0x4e   :  { %s977_s24 = scalar_lea.vmem %s81_s1, 1024  ;;  %p982_p8 = scmp.lt.s32.totalorder %s81_s1, %s81_s1 }
  0x4f   :  { %p978_p7 = scmp.ne.s32.totalorder %s81_s1, %s977_s24  ;;  %p983_p9 = scmp.lt.s32.totalorder %s977_s24, %s977_s24 }
  0x51   :  { %p984_p10 = por %p983_p9, %p982_p8 }
  0x53   :  { %p985_p11 = pnand %p984_p10, %p978_p7 }
  0x55   :  { %988 = shalt.err (!%p985_p11)
}
  0x56   :  { %86 = dma.hbm_to_vmem [thread:$0]  %s1309_s6, 1024, %s81_s1, [#allocation9], %s1072_s4, %s1072_s4, %s1073_s13  }
  0x57   :  { %s1076_s25 = smov [#allocation11]   ;;  %s989_s12 = scalar_lea.hbm %s1311_s8, 1024 }
  0x58   :  { %s94_s26 = sshll.u32 %s1076_s25, 4  ;;  %p990_p12 = scmp.ne.s32.totalorder %s1311_s8, %s989_s12  ;;  %s95_s26 = int_to_ptr.vmem [resolvable:$true] %s94_s26 }
  0x59   :  { %p993_p13 = scmp.lt.u32.totalorder %s989_s12, %s1311_s8 }
  0x5b   :  { %p995_p0 = pnand %p993_p13, %p990_p12 }
  0x5d   :  { %998 = shalt.err (!%p995_p0)
}
  0x5e   :  { %s999_s17 = scalar_lea.vmem %s95_s26, 1024  ;;  %p1004_p2 = scmp.lt.s32.totalorder %s95_s26, %s95_s26 }
  0x5f   :  { %p1000_p1 = scmp.ne.s32.totalorder %s95_s26, %s999_s17  ;;  %p1005_p3 = scmp.lt.s32.totalorder %s999_s17, %s999_s17 }
  0x61   :  { %p1006_p4 = por %p1005_p3, %p1004_p2 }
  0x63   :  { %p1007_p5 = pnand %p1006_p4, %p1000_p1 }
  0x65   :  { %1010 = shalt.err (!%p1007_p5)
}
  0x66   :  { %100 = dma.hbm_to_vmem [thread:$0]  %s1311_s8, 1024, %s95_s26, [#allocation12], %s1072_s4, %s1072_s4, %s1073_s13  }
  0x67   :  { %1055 = dma.done.wait [#allocation3], 128  }
  0x68   :  { %1056 = vsyncadd [#allocation3], 4294967168 }
  0x69   :  { %1057 = dma.done.wait [#allocation6], 1280  }
  0x6a   :  { %1058 = vsyncadd [#allocation6], 4294966016 }
  0x6b   :  { %1059 = dma.done.wait [#allocation9], 3072  }
  0x6c   :  { %1060 = vsyncadd [#allocation9], 4294964224 }
  0x6d   :  { %1061 = dma.done.wait [#allocation12], 1024  }
  0x6e   :  { %1062 = vsyncadd [#allocation12], 4294966272  ;;  %v1077_v0 = vmov 0.0   ;;  %vm1078_vm0 = vmmov 0   ;;  %v826_v1 = vld [vmem:[#allocation7] sm:$0xff]   ;;  %v827_v2 = vld [vmem:[#allocation7 + $0x8] sm:$0xff]   ;;  %v263_v51 = vlaneseq }
  0x6f   :  { %749 = vmatprep.subr.bf16.mxu0 %v1077_v0  ;;  %765 = vmatprep.mubr.msk.bf16.mxu0 %vm1078_vm0, %v1077_v0  ;;  %v828_v3 = vld [vmem:[#allocation7 + $0x10] sm:$0xff]   ;;  %v829_v4 = vld [vmem:[#allocation7 + $0x18] sm:$0xff]   ;;  %v835_v5 = vld [vmem:[#allocation8 + $0x4] ss:$8 sps:$4 sm:$0xff]   ;;  %v1079_v26 = vmov 0   ;;  %s1080_s20 = smov [#allocation14]  }
  0x70   :  { %750 = vmatpush3.bf16.msra.mxu0 %v826_v1  ;;  %v837_v6 = vld [vmem:[#allocation8] ss:$8 sps:$4 sm:$0xff]   ;;  %353 = vmatprep.subr.bf16.mxu1 %v835_v5  ;;  %v838_v7 = vld [vmem:[#allocation8 + $0x14] ss:$8 sps:$4 sm:$0xff]   ;;  %v840_v8 = vld [vmem:[#allocation8 + $0x10] ss:$8 sps:$4 sm:$0xff]  }
  0x71   :  { %751 = vmatprep.subr.bf16.mxu0 %v1077_v0  ;;  %354 = vmatpush1.bf16.msra.mxu1 %v837_v6  ;;  %v841_v9 = vld [vmem:[#allocation8 + $0x24] ss:$8 sps:$4 sm:$0xff]   ;;  %v843_v12 = vld [vmem:[#allocation8 + $0x20] ss:$8 sps:$4 sm:$0xff]   ;;  %v844_v13 = vld [vmem:[#allocation8 + $0x34] ss:$8 sps:$4 sm:$0xff]  }
  0x72   :  { %355 = vmatprep.subr.bf16.mxu1 %v838_v7  ;;  %v830_v10 = vld [vmem:[#allocation7 + $0x20] sm:$0xff]   ;;  %v831_v11 = vld [vmem:[#allocation7 + $0x28] sm:$0xff]   ;;  %v846_v14 = vld [vmem:[#allocation8 + $0x30] ss:$8 sps:$4 sm:$0xff]   ;;  %385 = vmatprep.mubr.bf16.mxu1 %v1079_v26  ;;  %v264_v52 = vshrl.u32 %v263_v51, 7  ;;  %s659_s21 = sshll.u32 %s1080_s20, 4  ;;  %s660_s21 = int_to_ptr.vmem [resolvable:$true] %s659_s21 }
  0x73   :  { %v847_v15 = vld [vmem:[#allocation8 + $0x44] ss:$8 sps:$4 sm:$0xff]   ;;  %v832_v16 = vld [vmem:[#allocation7 + $0x30] sm:$0xff]   ;;  %v849_v17 = vld [vmem:[#allocation8 + $0x40] ss:$8 sps:$4 sm:$0xff]   ;;  %s1011_s23 = scalar_lea.vmem %s660_s21, 512  ;;  %p1016_p7 = scmp.lt.s32.totalorder %s660_s21, %s660_s21 }
  0x74   :  { %752 = vmatpush3.bf16.msra.mxu0 %v827_v2  ;;  %v850_v18 = vld [vmem:[#allocation8 + $0x54] ss:$8 sps:$4 sm:$0xff]   ;;  %v852_v20 = vld [vmem:[#allocation8 + $0x50] ss:$8 sps:$4 sm:$0xff]   ;;  %v834_v21 = vld [vmem:[#allocation2] sm:$0xff]   ;;  %v265_v53 = vsub.s32 0, %v264_v52  ;;  %p1012_p6 = scmp.ne.s32.totalorder %s660_s21, %s1011_s23  ;;  %p1017_p8 = scmp.lt.s32.totalorder %s1011_s23, %s1011_s23 }
  0x75   :  { %753 = vmatprep.subr.bf16.mxu0 %v1077_v0  ;;  %356 = vmatpush1.bf16.msra.mxu1 %v840_v8  ;;  %v833_v19 = vld [vmem:[#allocation7 + $0x38] sm:$0xff]   ;;  %v853_v22 = vld [vmem:[#allocation8 + $0x64] ss:$8 sps:$4 sm:$0xff]   ;;  %v855_v23 = vld [vmem:[#allocation8 + $0x60] ss:$8 sps:$4 sm:$0xff]   ;;  %v269_v55 = vsub.s32 1, %v264_v52 }
  0x76   :  { %357 = vmatprep.subr.bf16.mxu1 %v841_v9  ;;  %v856_v24 = vld [vmem:[#allocation8 + $0x74] ss:$8 sps:$4 sm:$0xff]   ;;  %v858_v25 = vld [vmem:[#allocation8 + $0x70] ss:$8 sps:$4 sm:$0xff]   ;;  %v859_v27 = vld [vmem:[#allocation10] sm:$0xff]   ;;  %p1018_p9 = por %p1017_p8, %p1016_p7 }
  0x77   :  { %v678_v28 = vld [vmem:[%s1306_s3] ss:$0 sm:$0xff]  ;;  %v861_v39 = vld [vmem:[#allocation10 + $0x10] sm:$0xff]   ;;  %v862_v40 = vld [vmem:[#allocation10 + $0x18] sm:$0xff]  }
  0x78   :  { %754 = vmatpush3.bf16.msra.mxu0 %v828_v3  ;;  %v860_v38 = vld [vmem:[#allocation10 + $0x8] sm:$0xff]   ;;  %v863_v41 = vld [vmem:[#allocation10 + $0x20] sm:$0xff]   ;;  %v865_v43 = vld [vmem:[#allocation10 + $0x30] sm:$0xff]   ;;  %p1019_p10 = pnand %p1018_p9, %p1012_p6 }
  0x79   :  { %755 = vmatprep.subr.bf16.mxu0 %v1077_v0  ;;  %358 = vmatpush1.bf16.msra.mxu1 %v843_v12  ;;  %v864_v42 = vld [vmem:[#allocation10 + $0x28] sm:$0xff]   ;;  %v866_v44 = vld [vmem:[#allocation10 + $0x38] sm:$0xff]   ;;  %v867_v45 = vld [vmem:[#allocation11] sm:$0xff]  }
  0x7a   :  { %359 = vmatprep.subr.bf16.mxu1 %v844_v13  ;;  %v868_v46 = vld [vmem:[#allocation11 + $0x8] sm:$0xff]   ;;  %v869_v47 = vld [vmem:[#allocation11 + $0x10] sm:$0xff]   ;;  %v870_v48 = vld [vmem:[#allocation11 + $0x18] sm:$0xff]  }
  0x7b   :  { %v871_v49 = vld [vmem:[#allocation11 + $0x20] sm:$0xff]   ;;  %v872_v50 = vld [vmem:[#allocation11 + $0x28] sm:$0xff]   ;;  %v402_v7 = vld [vmem:[#allocation5] sm:$0xff] }
  0x7c   :  { %756 = vmatpush3.bf16.msra.mxu0 %v829_v4  ;;  %v261_v54 = vld [vmem:[%s1308_s5] sm:$0x3]  ;;  %v403_v9 = vld [vmem:[#allocation5 + $0x8] sm:$0xff] }
  0x7d   :  { %757 = vmatprep.subr.bf16.mxu0 %v1077_v0  ;;  %360 = vmatpush1.bf16.msra.mxu1 %v846_v14  ;;  %v266_v56 = vrot.slane %v261_v54, %v265_v53  ;;  %v270_v57 = vrot.slane %v261_v54, %v269_v55 }
  0x7e   :  { %361 = vmatprep.subr.bf16.mxu1 %v847_v15 }
  0x80   :  { %758 = vmatpush3.bf16.msra.mxu0 %v830_v10 }
  0x81   :  { %759 = vmatprep.subr.bf16.mxu0 %v1077_v0  ;;  %362 = vmatpush1.bf16.msra.mxu1 %v849_v17  ;;  %v874_v17 = vld [vmem:[#allocation11 + $0x38] sm:$0xff]  }
  0x82   :  { %363 = vmatprep.subr.bf16.mxu1 %v850_v18  ;;  %v704_v18 = vld [vmem:[%s1310_s7] ss:$0 sm:$0xff] }
  0x84   :  { %760 = vmatpush3.bf16.msra.mxu0 %v831_v11 }
  0x85   :  { %761 = vmatprep.subr.bf16.mxu0 %v1077_v0  ;;  %364 = vmatpush1.bf16.msra.mxu1 %v852_v20 }
  0x86   :  { %365 = vmatprep.subr.bf16.mxu1 %v853_v22 }
  0x88   :  { %762 = vmatpush3.bf16.msra.mxu0 %v832_v16  ;;  %v873_v16 = vld [vmem:[#allocation11 + $0x30] sm:$0xff]  }
  0x89   :  { %763 = vmatprep.subr.bf16.mxu0 %v1077_v0  ;;  %366 = vmatpush1.bf16.msra.mxu1 %v855_v23 }
  0x8a   :  { %367 = vmatprep.subr.bf16.mxu1 %v856_v24 }
  0x8c   :  { %764 = vmatpush3.bf16.msra.mxu0 %v833_v19 }
  0x8d   :  { %769 = vmatprep.subr.bf16.mxu0 %v1077_v0  ;;  %368 = vmatpush1.bf16.msra.mxu1 %v858_v25 }
  0x8e   :  { %789 = vmatprep.subr.bf16.mxu1 %v1077_v0 }
  0x8f   :  { %766 = vmatmul.mubr.bf16.vlgmr.msra.gmra.mrb[0].mxu0 %v834_v21 }
  0x90   :  { %785 = vmatprep.mubr.msk.bf16.mxu0 %vm1078_vm0, %v1077_v0  ;;  %770 = vmatpush3.bf16.msra.mxu0 %v859_v27 }
  0x91   :  { %771 = vmatprep.subr.bf16.mxu0 %v1077_v0 }
  0x94   :  { %772 = vmatpush3.bf16.msra.mxu0 %v860_v38 }
  0x95   :  { %773 = vmatprep.subr.bf16.mxu0 %v1077_v0 }
  0x98   :  { %774 = vmatpush3.bf16.msra.mxu0 %v861_v39 }
  0x99   :  { %775 = vmatprep.subr.bf16.mxu0 %v1077_v0 }
  0x9c   :  { %776 = vmatpush3.bf16.msra.mxu0 %v862_v40 }
  0x9d   :  { %777 = vmatprep.subr.bf16.mxu0 %v1077_v0 }
  0xa0   :  { %778 = vmatpush3.bf16.msra.mxu0 %v863_v41 }
  0xa1   :  { %779 = vmatprep.subr.bf16.mxu0 %v1077_v0 }
  0xa4   :  { %780 = vmatpush3.bf16.msra.mxu0 %v864_v42 }
  0xa5   :  { %781 = vmatprep.subr.bf16.mxu0 %v1077_v0 }
  0xa8   :  { %782 = vmatpush3.bf16.msra.mxu0 %v865_v43 }
  0xa9   :  { %783 = vmatprep.subr.bf16.mxu0 %v1077_v0 }
  0xac   :  { %784 = vmatpush3.bf16.msra.mxu0 %v866_v44 }
 0x162   :  { %v235_v29 = vpop.f32.mrb[0].mxu0 }
 0x163   :  { %v236_v30 = vadd.f32 %v678_v28, %v235_v29  ;;  %v767_v31 = vpop.f32.mrb[1].mxu0 }
 0x164   :  { %v238_v32 = vpop.f32.mrb[2].mxu0 }
 0x165   :  { %v239_v33 = vadd.f32 %v678_v28, %v238_v32  ;;  %v768_v34 = vpop.f32.mrb[3].mxu0  ;;  %v242_v35 = vmax.f32 %v236_v30, 0.0 }
 0x167   :  { %v243_v36 = vmax.f32 %v239_v33, 0.0 }
 0x169   :  { %v244_v37 = vpack.c.bf16 %v243_v36, %v242_v35 }
 0x16b   :  { %386 = vmatmul.mubr.bf16.vlgmr.msra.gmra.mrb[0].mxu1 %v244_v37 }
 0x16c   :  { %805 = vmatprep.mubr.msk.bf16.mxu1 %vm1078_vm0, %v1077_v0  ;;  %790 = vmatpush3.bf16.msra.mxu1 %v867_v45 }
 0x16d   :  { %791 = vmatprep.subr.bf16.mxu1 %v1077_v0 }
 0x170   :  { %792 = vmatpush3.bf16.msra.mxu1 %v868_v46 }
 0x171   :  { %793 = vmatprep.subr.bf16.mxu1 %v1077_v0 }
 0x174   :  { %794 = vmatpush3.bf16.msra.mxu1 %v869_v47 }
 0x175   :  { %795 = vmatprep.subr.bf16.mxu1 %v1077_v0 }
 0x178   :  { %796 = vmatpush3.bf16.msra.mxu1 %v870_v48 }
 0x179   :  { %797 = vmatprep.subr.bf16.mxu1 %v1077_v0 }
 0x17c   :  { %798 = vmatpush3.bf16.msra.mxu1 %v871_v49 }
 0x17d   :  { %799 = vmatprep.subr.bf16.mxu1 %v1077_v0 }
 0x180   :  { %800 = vmatpush3.bf16.msra.mxu1 %v872_v50 }
 0x181   :  { %801 = vmatprep.subr.bf16.mxu1 %v1077_v0 }
 0x184   :  { %802 = vmatpush3.bf16.msra.mxu1 %v873_v16 }
 0x185   :  { %803 = vmatprep.subr.bf16.mxu1 %v1077_v0 }
 0x188   :  { %804 = vmatpush3.bf16.msra.mxu1 %v874_v17 }
 0x23e   :  { %v387_v58 = vpop.f32.mrb[0].mxu1 }
 0x23f   :  { %v388_v59 = vadd.f32 %v387_v58, %v266_v56  ;;  %v389_v60 = vpop.f32.mrb[1].mxu1 }
 0x240   :  { %v390_v61 = vadd.f32 %v389_v60, %v270_v57  ;;  %v391_v62 = vpop.f32.mrb[2].mxu1 }
 0x241   :  { %638 = vst [vmem:[#allocation14] sm:$0xff] %v388_v59  ;;  %v392_v63 = vadd.f32 %v391_v62, %v266_v56  ;;  %v393_v1 = vpop.f32.mrb[3].mxu1 }
 0x242   :  { %v396_v2 = vmul.f32 0.5, %v390_v61  ;;  %639 = vst [vmem:[#allocation14 + $0x8] sm:$0xff] %v390_v61  ;;  %v394_v3 = vadd.f32 %v393_v1, %v270_v57 }
 0x243   :  { %640 = vst [vmem:[#allocation14 + $0x10] sm:$0xff] %v392_v63 }
 0x244   :  { %v398_v4 = vmul.f32 1.442695, %v396_v2  ;;  %v397_v5 = vmul.f32 0.5, %v394_v3  ;;  %641 = vst [vmem:[#allocation14 + $0x18] sm:$0xff] %v394_v3 }
 0x246   :  { %875 = vpow2.f32 %v398_v4  ;;  %v400_v6 = vmul.f32 1.442695, %v397_v5 }
 0x248   :  { %877 = vpow2.f32 %v400_v6 }
 0x250   :  { %v876_v8 = vpop.eup %875 }
 0x251   :  { %v404_v10 = vmul.f32 %v876_v8, %v402_v7 }
 0x252   :  { %v878_v11 = vpop.eup %877 }
 0x253   :  { %v405_v12 = vmul.f32 %v878_v11, %v403_v9  ;;  %v406_v13 = vadd.f32 %v404_v10, %v388_v59 }
 0x255   :  { %v407_v14 = vadd.f32 %v405_v12, %v392_v63 }
 0x257   :  { %v408_v15 = vpack.c.bf16 %v407_v14, %v406_v13 }
 0x259   :  { %786 = vmatmul.mubr.bf16.vlgmr.msra.gmra.mrb[4].mxu0 %v408_v15 }
 0x32c   :  { %v514_v19 = vpop.f32.mrb[4].mxu0 }
 0x32d   :  { %v515_v20 = vadd.f32 %v704_v18, %v514_v19  ;;  %v787_v21 = vpop.f32.mrb[5].mxu0 }
 0x32e   :  { %v517_v22 = vpop.f32.mrb[6].mxu0 }
 0x32f   :  { %v518_v23 = vadd.f32 %v704_v18, %v517_v22  ;;  %v788_v24 = vpop.f32.mrb[7].mxu0  ;;  %v521_v25 = vmax.f32 %v515_v20, 0.0 }
 0x331   :  { %v522_v26 = vmax.f32 %v518_v23, 0.0 }
 0x333   :  { %v523_v27 = vpack.c.bf16 %v522_v26, %v521_v25 }
 0x335   :  { %806 = vmatmul.mubr.bf16.vlgmr.msra.gmra.mrb[4].mxu1 %v523_v27 }
 0x336   :  { %1022 = shalt.err (!%p1019_p10)
}
 0x337   :  { %s1023_s24 = scalar_lea.hbm %s1314_s11, 512 }
 0x338   :  { %p1024_p11 = scmp.ne.s32.totalorder %s1314_s11, %s1023_s24  ;;  %p1027_p12 = scmp.lt.u32.totalorder %s1023_s24, %s1314_s11 }
 0x33a   :  { %p1029_p13 = pnand %p1027_p12, %p1024_p11 }
 0x33c   :  { %1032 = shalt.err (!%p1029_p13)
}
 0x33d   :  { %s1081_s29 = smov 256   ;;  %s1082_s30 = smov 16   ;;  %v713_v0 = vld [vmem:[%s1312_s9] ss:$0 sm:$0xff] }
 0x33e   :  { %665 = dma.vmem_to_hbm [thread:$0]  %s660_s21, 512, %s1314_s11, [#allocation15], %s1081_s29, %s1081_s29, %s1082_s30  }
 0x33f   :  { %s1083_s16 = smov [#allocation13]  }
 0x340   :  { %s647_s17 = sshll.u32 %s1083_s16, 4  ;;  %s648_s17 = int_to_ptr.vmem [resolvable:$true] %s647_s17 }
 0x341   :  { %s1033_s6 = scalar_lea.vmem %s648_s17, 256  ;;  %p1038_p1 = scmp.lt.s32.totalorder %s648_s17, %s648_s17 }
 0x342   :  { %p1034_p0 = scmp.ne.s32.totalorder %s648_s17, %s1033_s6  ;;  %p1039_p2 = scmp.lt.s32.totalorder %s1033_s6, %s1033_s6 }
 0x344   :  { %p1040_p3 = por %p1039_p2, %p1038_p1 }
 0x346   :  { %p1041_p4 = pnand %p1040_p3, %p1034_p0 }
 0x408   :  { %v629_v28 = vpop.f32.mrb[4].mxu1 }
 0x409   :  { %v630_v29 = vadd.f32 %v713_v0, %v629_v28  ;;  %v807_v30 = vpop.f32.mrb[5].mxu1 }
 0x40a   :  { %v632_v31 = vpop.f32.mrb[6].mxu1 }
 0x40b   :  { %636 = vst [vmem:[#allocation13] sm:$0xff] %v630_v29  ;;  %v633_v32 = vadd.f32 %v713_v0, %v632_v31  ;;  %v808_v33 = vpop.f32.mrb[7].mxu1 }
 0x40d   :  { %637 = vst [vmem:[#allocation13 + $0x8] sm:$0xff] %v633_v32 }
 0x40e   :  { %1044 = shalt.err (!%p1041_p4)
}
 0x40f   :  { %s1045_s1 = scalar_lea.hbm %s1313_s10, 256 }
 0x410   :  { %p1046_p5 = scmp.ne.s32.totalorder %s1313_s10, %s1045_s1  ;;  %p1049_p6 = scmp.lt.u32.totalorder %s1045_s1, %s1313_s10 }
 0x412   :  { %p1051_p7 = pnand %p1049_p6, %p1046_p5 }
 0x414   :  { %1054 = shalt.err (!%p1051_p7)
}
 0x415   :  { %653 = dma.vmem_to_hbm [thread:$0]  %s648_s17, 256, %s1313_s10, [#allocation4], %s1068_s27, %s1068_s27, %s1069_s28  }
 0x416   :  { %1063 = dma.done.wait [#allocation4], 256  }
 0x417   :  { %1064 = vsyncadd [#allocation4], 4294967040 }
 0x418   :  { %1065 = dma.done.wait [#allocation15], 512  }
 0x419   :  { %1066 = vsyncadd [#allocation15], 4294966784 }
 0x41a   :  { %672 = vsyncpa [#allocation3], 1 }
 0x41b   :  { %673 = vsyncpa [#allocation6], 1 }
 0x41c   :  { %674 = vsyncpa [#allocation9], 1 }
 0x41d   :  { %675 = vsyncpa [#allocation12], 1 }
 0x41e   :  { %676 = vsyncpa [#allocation4], 1 }
 0x41f   :  { %677 = vsyncpa [#allocation15], 1 }

// kernel: tpu_custom_call.1
= control target key start
LH: loop header
LB: loop body
LE: loop exit
PB: predicated region body
PF: predicated region fallthrough
CT: control target
= control target key end

     0   :  { %17 = vsyncpa [#allocation3], 0  ;;  %s1303_s0 = inlined_call_operand.hbm [shape: bf16[16,128], index: 0, kind: input, shape index: {}]   ;;  %s1304_s1 = inlined_call_operand.hbm [shape: f32[16,128], index: 1, kind: input, shape index: {}]   ;;  %s1305_s2 = inlined_call_operand.hbm [shape: bf16[128,128], index: 2, kind: input, shape index: {}]   ;;  %s1306_s3 = inlined_call_operand.vmem [shape: f32[1,128], index: 3, kind: input, shape index: {}]   ;;  %s1307_s4 = inlined_call_operand.hbm [shape: bf16[128,256], index: 4, kind: input, shape index: {}]   ;;  %s1308_s5 = inlined_call_operand.vmem [shape: f32[1,256], index: 5, kind: input, shape index: {}]   ;;  %s1309_s6 = inlined_call_operand.hbm [shape: bf16[128,128], index: 6, kind: input, shape index: {}]   ;;  %s1310_s7 = inlined_call_operand.vmem [shape: f32[1,128], index: 7, kind: input, shape index: {}]   ;;  %s1311_s8 = inlined_call_operand.hbm [shape: bf16[128,128], index: 8, kind: input, shape index: {}]   ;;  %s1312_s9 = inlined_call_operand.vmem [shape: f32[1,128], index: 9, kind: input, shape index: {}]   ;;  %s1313_s10 = inlined_call_operand.hbm [shape: f32[16,128], index: 10, kind: output, shape index: {0}]   ;;  %s1314_s11 = inlined_call_operand.hbm [shape: f32[16,256], index: 11, kind: output, shape index: {1}]  }
   0x1   :  { %18 = vsyncpa [#allocation6], 0 }
   0x2   :  { %19 = vsyncpa [#allocation9], 0 }
   0x3   :  { %20 = vsyncpa [#allocation12], 0 }
   0x4   :  { %21 = vsyncpa [#allocation4], 0 }
   0x5   :  { %22 = vsyncpa [#allocation15], 0  ;;  %s1067_s17 = smov [#allocation5]   ;;  %s879_s21 = scalar_lea.hbm %s1304_s1, 256 }
   0x6   :  { %s40_s18 = sshll.u32 %s1067_s17, 4  ;;  %p880_p0 = scmp.ne.s32.totalorder %s1304_s1, %s879_s21  ;;  %s41_s18 = int_to_ptr.vmem [resolvable:$true] %s40_s18 }
   0x7   :  { %p883_p1 = scmp.lt.u32.totalorder %s879_s21, %s1304_s1 }
   0x9   :  { %p885_p2 = pnand %p883_p1, %p880_p0 }
   0xb   :  { %888 = shalt.err (!%p885_p2)
}
   0xc   :  { %s889_s26 = scalar_lea.vmem %s41_s18, 256  ;;  %p894_p4 = scmp.lt.s32.totalorder %s41_s18, %s41_s18 }
   0xd   :  { %p890_p3 = scmp.ne.s32.totalorder %s41_s18, %s889_s26  ;;  %p895_p5 = scmp.lt.s32.totalorder %s889_s26, %s889_s26 }
   0xf   :  { %p896_p6 = por %p895_p5, %p894_p4 }
  0x11   :  { %p897_p7 = pnand %p896_p6, %p890_p3 }
  0x13   :  { %900 = shalt.err (!%p897_p7)
}
  0x14   :  { %s1068_s27 = smov 128   ;;  %s1069_s28 = smov 8  }
  0x15   :  { %46 = dma.hbm_to_vmem [thread:$0]  %s1304_s1, 256, %s41_s18, [#allocation6], %s1068_s27, %s1068_s27, %s1069_s28  }
  0x16   :  { %s1070_s12 = smov [#allocation8]   ;;  %s1071_s14 = smov [#allocation2]  }
  0x17   :  { %s66_s13 = sshll.u32 %s1070_s12, 4  ;;  %s28_s15 = sshll.u32 %s1071_s14, 4  ;;  %s67_s13 = int_to_ptr.vmem [resolvable:$true] %s66_s13  ;;  %s29_s15 = int_to_ptr.vmem [resolvable:$true] %s28_s15 }
  0x18   :  { %s901_s19 = scalar_lea.hbm %s1307_s4, 2048 }
  0x19   :  { %p902_p8 = scmp.ne.s32.totalorder %s1307_s4, %s901_s19  ;;  %p905_p9 = scmp.lt.u32.totalorder %s901_s19, %s1307_s4 }
  0x1b   :  { %p907_p10 = pnand %p905_p9, %p902_p8 }
  0x1d   :  { %910 = shalt.err (!%p907_p10)
}
  0x1e   :  { %s911_s1 = scalar_lea.vmem %s67_s13, 2048  ;;  %p916_p12 = scmp.lt.s32.totalorder %s67_s13, %s67_s13 }
  0x1f   :  { %p912_p11 = scmp.ne.s32.totalorder %s67_s13, %s911_s1  ;;  %p917_p13 = scmp.lt.s32.totalorder %s911_s1, %s911_s1 }
  0x21   :  { %p918_p0 = por %p917_p13, %p916_p12 }
  0x23   :  { %p919_p1 = pnand %p918_p0, %p912_p11 }
  0x25   :  { %922 = shalt.err (!%p919_p1)
}
  0x26   :  { %72 = dma.hbm_to_vmem [thread:$0]  %s1307_s4, 2048, %s67_s13, [#allocation9], %s1068_s27, %s1068_s27, %s1069_s28  }
  0x27   :  { %s923_s29 = scalar_lea.hbm %s1303_s0, 128 }
  0x28   :  { %p924_p2 = scmp.ne.s32.totalorder %s1303_s0, %s923_s29  ;;  %p927_p3 = scmp.lt.u32.totalorder %s923_s29, %s1303_s0 }
  0x2a   :  { %p929_p4 = pnand %p927_p3, %p924_p2 }
  0x2c   :  { %932 = shalt.err (!%p929_p4)
}
  0x2d   :  { %s933_s17 = scalar_lea.vmem %s29_s15, 128  ;;  %p938_p6 = scmp.lt.s32.totalorder %s29_s15, %s29_s15 }
  0x2e   :  { %p934_p5 = scmp.ne.s32.totalorder %s29_s15, %s933_s17  ;;  %p939_p7 = scmp.lt.s32.totalorder %s933_s17, %s933_s17 }
  0x30   :  { %p940_p8 = por %p939_p7, %p938_p6 }
  0x32   :  { %p941_p9 = pnand %p940_p8, %p934_p5 }
  0x34   :  { %944 = shalt.err (!%p941_p9)
}
  0x35   :  { %s1072_s4 = smov 64   ;;  %s1073_s13 = smov 4  }
  0x36   :  { %34 = dma.hbm_to_vmem [thread:$0]  %s1303_s0, 128, %s29_s15, [#allocation3], %s1072_s4, %s1072_s4, %s1073_s13  }
  0x37   :  { %s1074_s21 = smov [#allocation7]   ;;  %s1075_s23 = smov [#allocation10]  }
  0x38   :  { %s52_s22 = sshll.u32 %s1074_s21, 4  ;;  %s80_s1 = sshll.u32 %s1075_s23, 4  ;;  %s53_s22 = int_to_ptr.vmem [resolvable:$true] %s52_s22  ;;  %s81_s1 = int_to_ptr.vmem [resolvable:$true] %s80_s1 }
  0x39   :  { %s945_s25 = scalar_lea.hbm %s1305_s2, 1024 }
  0x3a   :  { %p946_p10 = scmp.ne.s32.totalorder %s1305_s2, %s945_s25  ;;  %p949_p11 = scmp.lt.u32.totalorder %s945_s25, %s1305_s2 }
  0x3c   :  { %p951_p12 = pnand %p949_p11, %p946_p10 }
  0x3e   :  { %954 = shalt.err (!%p951_p12)
}
  0x3f   :  { %s955_s0 = scalar_lea.vmem %s53_s22, 1024  ;;  %p960_p0 = scmp.lt.s32.totalorder %s53_s22, %s53_s22 }
  0x40   :  { %p956_p13 = scmp.ne.s32.totalorder %s53_s22, %s955_s0  ;;  %p961_p1 = scmp.lt.s32.totalorder %s955_s0, %s955_s0 }
  0x42   :  { %p962_p2 = por %p961_p1, %p960_p0 }
  0x44   :  { %p963_p3 = pnand %p962_p2, %p956_p13 }
  0x46   :  { %966 = shalt.err (!%p963_p3)
}
  0x47   :  { %58 = dma.hbm_to_vmem [thread:$0]  %s1305_s2, 1024, %s53_s22, [#allocation6], %s1072_s4, %s1072_s4, %s1073_s13  }
  0x48   :  { %s967_s19 = scalar_lea.hbm %s1309_s6, 1024 }
  0x49   :  { %p968_p4 = scmp.ne.s32.totalorder %s1309_s6, %s967_s19  ;;  %p971_p5 = scmp.lt.u32.totalorder %s967_s19, %s1309_s6 }
  0x4b   :  { %p973_p6 = pnand %p971_p5, %p968_p4 }
  0x4d   :  { %976 = shalt.err (!%p973_p6)
}
  0x4e   :  { %s977_s24 = scalar_lea.vmem %s81_s1, 1024  ;;  %p982_p8 = scmp.lt.s32.totalorder %s81_s1, %s81_s1 }
  0x4f   :  { %p978_p7 = scmp.ne.s32.totalorder %s81_s1, %s977_s24  ;;  %p983_p9 = scmp.lt.s32.totalorder %s977_s24, %s977_s24 }
  0x51   :  { %p984_p10 = por %p983_p9, %p982_p8 }
  0x53   :  { %p985_p11 = pnand %p984_p10, %p978_p7 }
  0x55   :  { %988 = shalt.err (!%p985_p11)
}
  0x56   :  { %86 = dma.hbm_to_vmem [thread:$0]  %s1309_s6, 1024, %s81_s1, [#allocation9], %s1072_s4, %s1072_s4, %s1073_s13  }
  0x57   :  { %s1076_s25 = smov [#allocation11]   ;;  %s989_s12 = scalar_lea.hbm %s1311_s8, 1024 }
  0x58   :  { %s94_s26 = sshll.u32 %s1076_s25, 4  ;;  %p990_p12 = scmp.ne.s32.totalorder %s1311_s8, %s989_s12  ;;  %s95_s26 = int_to_ptr.vmem [resolvable:$true] %s94_s26 }
  0x59   :  { %p993_p13 = scmp.lt.u32.totalorder %s989_s12, %s1311_s8 }
  0x5b   :  { %p995_p0 = pnand %p993_p13, %p990_p12 }
  0x5d   :  { %998 = shalt.err (!%p995_p0)
}
  0x5e   :  { %s999_s17 = scalar_lea.vmem %s95_s26, 1024  ;;  %p1004_p2 = scmp.lt.s32.totalorder %s95_s26, %s95_s26 }
  0x5f   :  { %p1000_p1 = scmp.ne.s32.totalorder %s95_s26, %s999_s17  ;;  %p1005_p3 = scmp.lt.s32.totalorder %s999_s17, %s999_s17 }
  0x61   :  { %p1006_p4 = por %p1005_p3, %p1004_p2 }
  0x63   :  { %p1007_p5 = pnand %p1006_p4, %p1000_p1 }
  0x65   :  { %1010 = shalt.err (!%p1007_p5)
}
  0x66   :  { %100 = dma.hbm_to_vmem [thread:$0]  %s1311_s8, 1024, %s95_s26, [#allocation12], %s1072_s4, %s1072_s4, %s1073_s13  }
  0x67   :  { %1055 = dma.done.wait [#allocation3], 128  }
  0x68   :  { %1056 = vsyncadd [#allocation3], 4294967168 }
  0x69   :  { %1057 = dma.done.wait [#allocation6], 1280  }
  0x6a   :  { %1058 = vsyncadd [#allocation6], 4294966016 }
  0x6b   :  { %1059 = dma.done.wait [#allocation9], 3072  }
  0x6c   :  { %1060 = vsyncadd [#allocation9], 4294964224 }
  0x6d   :  { %1061 = dma.done.wait [#allocation12], 1024  }
  0x6e   :  { %1062 = vsyncadd [#allocation12], 4294966272  ;;  %v1077_v0 = vmov 0.0   ;;  %vm1078_vm0 = vmmov 0   ;;  %v826_v1 = vld [vmem:[#allocation7] sm:$0xff]   ;;  %v827_v2 = vld [vmem:[#allocation7 + $0x8] sm:$0xff]   ;;  %v263_v51 = vlaneseq }
  0x6f   :  { %749 = vmatprep.subr.bf16.mxu0 %v1077_v0  ;;  %765 = vmatprep.mubr.msk.bf16.mxu0 %vm1078_vm0, %v1077_v0  ;;  %v828_v3 = vld [vmem:[#allocation7 + $0x10] sm:$0xff]   ;;  %v829_v4 = vld [vmem:[#allocation7 + $0x18] sm:$0xff]   ;;  %v835_v5 = vld [vmem:[#allocation8 + $0x4] ss:$8 sps:$4 sm:$0xff]   ;;  %v1079_v26 = vmov 0   ;;  %s1080_s20 = smov [#allocation14]  }
  0x70   :  { %750 = vmatpush3.bf16.msra.mxu0 %v826_v1  ;;  %v837_v6 = vld [vmem:[#allocation8] ss:$8 sps:$4 sm:$0xff]   ;;  %353 = vmatprep.subr.bf16.mxu1 %v835_v5  ;;  %v838_v7 = vld [vmem:[#allocation8 + $0x14] ss:$8 sps:$4 sm:$0xff]   ;;  %v840_v8 = vld [vmem:[#allocation8 + $0x10] ss:$8 sps:$4 sm:$0xff]  }
  0x71   :  { %751 = vmatprep.subr.bf16.mxu0 %v1077_v0  ;;  %354 = vmatpush1.bf16.msra.mxu1 %v837_v6  ;;  %v841_v9 = vld [vmem:[#allocation8 + $0x24] ss:$8 sps:$4 sm:$0xff]   ;;  %v843_v12 = vld [vmem:[#allocation8 + $0x20] ss:$8 sps:$4 sm:$0xff]   ;;  %v844_v13 = vld [vmem:[#allocation8 + $0x34] ss:$8 sps:$4 sm:$0xff]  }
  0x72   :  { %355 = vmatprep.subr.bf16.mxu1 %v838_v7  ;;  %v830_v10 = vld [vmem:[#allocation7 + $0x20] sm:$0xff]   ;;  %v831_v11 = vld [vmem:[#allocation7 + $0x28] sm:$0xff]   ;;  %v846_v14 = vld [vmem:[#allocation8 + $0x30] ss:$8 sps:$4 sm:$0xff]   ;;  %385 = vmatprep.mubr.bf16.mxu1 %v1079_v26  ;;  %v264_v52 = vshrl.u32 %v263_v51, 7  ;;  %s659_s21 = sshll.u32 %s1080_s20, 4  ;;  %s660_s21 = int_to_ptr.vmem [resolvable:$true] %s659_s21 }
  0x73   :  { %v847_v15 = vld [vmem:[#allocation8 + $0x44] ss:$8 sps:$4 sm:$0xff]   ;;  %v832_v16 = vld [vmem:[#allocation7 + $0x30] sm:$0xff]   ;;  %v849_v17 = vld [vmem:[#allocation8 + $0x40] ss:$8 sps:$4 sm:$0xff]   ;;  %s1011_s23 = scalar_lea.vmem %s660_s21, 512  ;;  %p1016_p7 = scmp.lt.s32.totalorder %s660_s21, %s660_s21 }
  0x74   :  { %752 = vmatpush3.bf16.msra.mxu0 %v827_v2  ;;  %v850_v18 = vld [vmem:[#allocation8 + $0x54] ss:$8 sps:$4 sm:$0xff]   ;;  %v852_v20 = vld [vmem:[#allocation8 + $0x50] ss:$8 sps:$4 sm:$0xff]   ;;  %v834_v21 = vld [vmem:[#allocation2] sm:$0xff]   ;;  %v265_v53 = vsub.s32 0, %v264_v52  ;;  %p1012_p6 = scmp.ne.s32.totalorder %s660_s21, %s1011_s23  ;;  %p1017_p8 = scmp.lt.s32.totalorder %s1011_s23, %s1011_s23 }
  0x75   :  { %753 = vmatprep.subr.bf16.mxu0 %v1077_v0  ;;  %356 = vmatpush1.bf16.msra.mxu1 %v840_v8  ;;  %v833_v19 = vld [vmem:[#allocation7 + $0x38] sm:$0xff]   ;;  %v853_v22 = vld [vmem:[#allocation8 + $0x64] ss:$8 sps:$4 sm:$0xff]   ;;  %v855_v23 = vld [vmem:[#allocation8 + $0x60] ss:$8 sps:$4 sm:$0xff]   ;;  %v269_v55 = vsub.s32 1, %v264_v52 }
  0x76   :  { %357 = vmatprep.subr.bf16.mxu1 %v841_v9  ;;  %v856_v24 = vld [vmem:[#allocation8 + $0x74] ss:$8 sps:$4 sm:$0xff]   ;;  %v858_v25 = vld [vmem:[#allocation8 + $0x70] ss:$8 sps:$4 sm:$0xff]   ;;  %v859_v27 = vld [vmem:[#allocation10] sm:$0xff]   ;;  %p1018_p9 = por %p1017_p8, %p1016_p7 }
  0x77   :  { %v678_v28 = vld [vmem:[%s1306_s3] ss:$0 sm:$0xff]  ;;  %v861_v39 = vld [vmem:[#allocation10 + $0x10] sm:$0xff]   ;;  %v862_v40 = vld [vmem:[#allocation10 + $0x18] sm:$0xff]  }
  0x78   :  { %754 = vmatpush3.bf16.msra.mxu0 %v828_v3  ;;  %v860_v38 = vld [vmem:[#allocation10 + $0x8] sm:$0xff]   ;;  %v863_v41 = vld [vmem:[#allocation10 + $0x20] sm:$0xff]   ;;  %v865_v43 = vld [vmem:[#allocation10 + $0x30] sm:$0xff]   ;;  %p1019_p10 = pnand %p1018_p9, %p1012_p6 }
  0x79   :  { %755 = vmatprep.subr.bf16.mxu0 %v1077_v0  ;;  %358 = vmatpush1.bf16.msra.mxu1 %v843_v12  ;;  %v864_v42 = vld [vmem:[#allocation10 + $0x28] sm:$0xff]   ;;  %v866_v44 = vld [vmem:[#allocation10 + $0x38] sm:$0xff]   ;;  %v867_v45 = vld [vmem:[#allocation11] sm:$0xff]  }
  0x7a   :  { %359 = vmatprep.subr.bf16.mxu1 %v844_v13  ;;  %v868_v46 = vld [vmem:[#allocation11 + $0x8] sm:$0xff]   ;;  %v869_v47 = vld [vmem:[#allocation11 + $0x10] sm:$0xff]   ;;  %v870_v48 = vld [vmem:[#allocation11 + $0x18] sm:$0xff]  }
  0x7b   :  { %v871_v49 = vld [vmem:[#allocation11 + $0x20] sm:$0xff]   ;;  %v872_v50 = vld [vmem:[#allocation11 + $0x28] sm:$0xff]   ;;  %v402_v7 = vld [vmem:[#allocation5] sm:$0xff] }
  0x7c   :  { %756 = vmatpush3.bf16.msra.mxu0 %v829_v4  ;;  %v261_v54 = vld [vmem:[%s1308_s5] sm:$0x3]  ;;  %v403_v9 = vld [vmem:[#allocation5 + $0x8] sm:$0xff] }
  0x7d   :  { %757 = vmatprep.subr.bf16.mxu0 %v1077_v0  ;;  %360 = vmatpush1.bf16.msra.mxu1 %v846_v14  ;;  %v266_v56 = vrot.slane %v261_v54, %v265_v53  ;;  %v270_v57 = vrot.slane %v261_v54, %v269_v55 }
  0x7e   :  { %361 = vmatprep.subr.bf16.mxu1 %v847_v15 }
  0x80   :  { %758 = vmatpush3.bf16.msra.mxu0 %v830_v10 }
  0x81   :  { %759 = vmatprep.subr.bf16.mxu0 %v1077_v0  ;;  %362 = vmatpush1.bf16.msra.mxu1 %v849_v17  ;;  %v874_v17 = vld [vmem:[#allocation11 + $0x38] sm:$0xff]  }
  0x82   :  { %363 = vmatprep.subr.bf16.mxu1 %v850_v18  ;;  %v704_v18 = vld [vmem:[%s1310_s7] ss:$0 sm:$0xff] }
  0x84   :  { %760 = vmatpush3.bf16.msra.mxu0 %v831_v11 }
  0x85   :  { %761 = vmatprep.subr.bf16.mxu0 %v1077_v0  ;;  %364 = vmatpush1.bf16.msra.mxu1 %v852_v20 }
  0x86   :  { %365 = vmatprep.subr.bf16.mxu1 %v853_v22 }
  0x88   :  { %762 = vmatpush3.bf16.msra.mxu0 %v832_v16  ;;  %v873_v16 = vld [vmem:[#allocation11 + $0x30] sm:$0xff]  }
  0x89   :  { %763 = vmatprep.subr.bf16.mxu0 %v1077_v0  ;;  %366 = vmatpush1.bf16.msra.mxu1 %v855_v23 }
  0x8a   :  { %367 = vmatprep.subr.bf16.mxu1 %v856_v24 }
  0x8c   :  { %764 = vmatpush3.bf16.msra.mxu0 %v833_v19 }
  0x8d   :  { %769 = vmatprep.subr.bf16.mxu0 %v1077_v0  ;;  %368 = vmatpush1.bf16.msra.mxu1 %v858_v25 }
  0x8e   :  { %789 = vmatprep.subr.bf16.mxu1 %v1077_v0 }
  0x8f   :  { %766 = vmatmul.mubr.bf16.vlgmr.msra.gmra.mrb[0].mxu0 %v834_v21 }
  0x90   :  { %785 = vmatprep.mubr.msk.bf16.mxu0 %vm1078_vm0, %v1077_v0  ;;  %770 = vmatpush3.bf16.msra.mxu0 %v859_v27 }
  0x91   :  { %771 = vmatprep.subr.bf16.mxu0 %v1077_v0 }
  0x94   :  { %772 = vmatpush3.bf16.msra.mxu0 %v860_v38 }
  0x95   :  { %773 = vmatprep.subr.bf16.mxu0 %v1077_v0 }
  0x98   :  { %774 = vmatpush3.bf16.msra.mxu0 %v861_v39 }
  0x99   :  { %775 = vmatprep.subr.bf16.mxu0 %v1077_v0 }
  0x9c   :  { %776 = vmatpush3.bf16.msra.mxu0 %v862_v40 }
  0x9d   :  { %777 = vmatprep.subr.bf16.mxu0 %v1077_v0 }
  0xa0   :  { %778 = vmatpush3.bf16.msra.mxu0 %v863_v41 }
  0xa1   :  { %779 = vmatprep.subr.bf16.mxu0 %v1077_v0 }
  0xa4   :  { %780 = vmatpush3.bf16.msra.mxu0 %v864_v42 }
  0xa5   :  { %781 = vmatprep.subr.bf16.mxu0 %v1077_v0 }
  0xa8   :  { %782 = vmatpush3.bf16.msra.mxu0 %v865_v43 }
  0xa9   :  { %783 = vmatprep.subr.bf16.mxu0 %v1077_v0 }
  0xac   :  { %784 = vmatpush3.bf16.msra.mxu0 %v866_v44 }
 0x162   :  { %v235_v29 = vpop.f32.mrb[0].mxu0 }
 0x163   :  { %v236_v30 = vadd.f32 %v678_v28, %v235_v29  ;;  %v767_v31 = vpop.f32.mrb[1].mxu0 }
 0x164   :  { %v238_v32 = vpop.f32.mrb[2].mxu0 }
 0x165   :  { %v239_v33 = vadd.f32 %v678_v28, %v238_v32  ;;  %v768_v34 = vpop.f32.mrb[3].mxu0  ;;  %v242_v35 = vmax.f32 %v236_v30, 0.0 }
 0x167   :  { %v243_v36 = vmax.f32 %v239_v33, 0.0 }
 0x169   :  { %v244_v37 = vpack.c.bf16 %v243_v36, %v242_v35 }
 0x16b   :  { %386 = vmatmul.mubr.bf16.vlgmr.msra.gmra.mrb[0].mxu1 %v244_v37 }
 0x16c   :  { %805 = vmatprep.mubr.msk.bf16.mxu1 %vm1078_vm0, %v1077_v0  ;;  %790 = vmatpush3.bf16.msra.mxu1 %v867_v45 }
 0x16d   :  { %791 = vmatprep.subr.bf16.mxu1 %v1077_v0 }
 0x170   :  { %792 = vmatpush3.bf16.msra.mxu1 %v868_v46 }
 0x171   :  { %793 = vmatprep.subr.bf16.mxu1 %v1077_v0 }
 0x174   :  { %794 = vmatpush3.bf16.msra.mxu1 %v869_v47 }
 0x175   :  { %795 = vmatprep.subr.bf16.mxu1 %v1077_v0 }
 0x178   :  { %796 = vmatpush3.bf16.msra.mxu1 %v870_v48 }
 0x179   :  { %797 = vmatprep.subr.bf16.mxu1 %v1077_v0 }
 0x17c   :  { %798 = vmatpush3.bf16.msra.mxu1 %v871_v49 }
 0x17d   :  { %799 = vmatprep.subr.bf16.mxu1 %v1077_v0 }
 0x180   :  { %800 = vmatpush3.bf16.msra.mxu1 %v872_v50 }
 0x181   :  { %801 = vmatprep.subr.bf16.mxu1 %v1077_v0 }
 0x184   :  { %802 = vmatpush3.bf16.msra.mxu1 %v873_v16 }
 0x185   :  { %803 = vmatprep.subr.bf16.mxu1 %v1077_v0 }
 0x188   :  { %804 = vmatpush3.bf16.msra.mxu1 %v874_v17 }
 0x23e   :  { %v387_v58 = vpop.f32.mrb[0].mxu1 }
 0x23f   :  { %v388_v59 = vadd.f32 %v387_v58, %v266_v56  ;;  %v389_v60 = vpop.f32.mrb[1].mxu1 }
 0x240   :  { %v390_v61 = vadd.f32 %v389_v60, %v270_v57  ;;  %v391_v62 = vpop.f32.mrb[2].mxu1 }
 0x241   :  { %638 = vst [vmem:[#allocation14] sm:$0xff] %v388_v59  ;;  %v392_v63 = vadd.f32 %v391_v62, %v266_v56  ;;  %v393_v1 = vpop.f32.mrb[3].mxu1 }
 0x242   :  { %v396_v2 = vmul.f32 0.5, %v390_v61  ;;  %639 = vst [vmem:[#allocation14 + $0x8] sm:$0xff] %v390_v61  ;;  %v394_v3 = vadd.f32 %v393_v1, %v270_v57 }
 0x243   :  { %640 = vst [vmem:[#allocation14 + $0x10] sm:$0xff] %v392_v63 }
 0x244   :  { %v398_v4 = vmul.f32 1.442695, %v396_v2  ;;  %v397_v5 = vmul.f32 0.5, %v394_v3  ;;  %641 = vst [vmem:[#allocation14 + $0x18] sm:$0xff] %v394_v3 }
 0x246   :  { %875 = vpow2.f32 %v398_v4  ;;  %v400_v6 = vmul.f32 1.442695, %v397_v5 }
 0x248   :  { %877 = vpow2.f32 %v400_v6 }
 0x250   :  { %v876_v8 = vpop.eup %875 }
 0x251   :  { %v404_v10 = vmul.f32 %v876_v8, %v402_v7 }
 0x252   :  { %v878_v11 = vpop.eup %877 }
 0x253   :  { %v405_v12 = vmul.f32 %v878_v11, %v403_v9  ;;  %v406_v13 = vadd.f32 %v404_v10, %v388_v59 }
 0x255   :  { %v407_v14 = vadd.f32 %v405_v12, %v392_v63 }
 0x257   :  { %v408_v15 = vpack.c.bf16 %v407_v14, %v406_v13 }
 0x259   :  { %786 = vmatmul.mubr.bf16.vlgmr.msra.gmra.mrb[4].mxu0 %v408_v15 }
 0x32c   :  { %v514_v19 = vpop.f32.mrb[4].mxu0 }
 0x32d   :  { %v515_v20 = vadd.f32 %v704_v18, %v514_v19  ;;  %v787_v21 = vpop.f32.mrb[5].mxu0 }
 0x32e   :  { %v517_v22 = vpop.f32.mrb[6].mxu0 }
 0x32f   :  { %v518_v23 = vadd.f32 %v704_v18, %v517_v22  ;;  %v788_v24 = vpop.f32.mrb[7].mxu0  ;;  %v521_v25 = vmax.f32 %v515_v20, 0.0 }
 0x331   :  { %v522_v26 = vmax.f32 %v518_v23, 0.0 }
 0x333   :  { %v523_v27 = vpack.c.bf16 %v522_v26, %v521_v25 }
 0x335   :  { %806 = vmatmul.mubr.bf16.vlgmr.msra.gmra.mrb[4].mxu1 %v523_v27 }
 0x336   :  { %1022 = shalt.err (!%p1019_p10)
}
 0x337   :  { %s1023_s24 = scalar_lea.hbm %s1314_s11, 512 }
 0x338   :  { %p1024_p11 = scmp.ne.s32.totalorder %s1314_s11, %s1023_s24  ;;  %p1027_p12 = scmp.lt.u32.totalorder %s1023_s24, %s1314_s11 }
 0x33a   :  { %p1029_p13 = pnand %p1027_p12, %p1024_p11 }
 0x33c   :  { %1032 = shalt.err (!%p1029_p13)
}
 0x33d   :  { %s1081_s29 = smov 256   ;;  %s1082_s30 = smov 16   ;;  %v713_v0 = vld [vmem:[%s1312_s9] ss:$0 sm:$0xff] }
 0x33e   :  { %665 = dma.vmem_to_hbm [thread:$0]  %s660_s21, 512, %s1314_s11, [#allocation15], %s1081_s29, %s1081_s29, %s1082_s30  }
 0x33f   :  { %s1083_s16 = smov [#allocation13]  }
 0x340   :  { %s647_s17 = sshll.u32 %s1083_s16, 4  ;;  %s648_s17 = int_to_ptr.vmem [resolvable:$true] %s647_s17 }
 0x341   :  { %s1033_s6 = scalar_lea.vmem %s648_s17, 256  ;;  %p1038_p1 = scmp.lt.s32.totalorder %s648_s17, %s648_s17 }
 0x342   :  { %p1034_p0 = scmp.ne.s32.totalorder %s648_s17, %s1033_s6  ;;  %p1039_p2 = scmp.lt.s32.totalorder %s1033_s6, %s1033_s6 }
 0x344   :  { %p1040_p3 = por %p1039_p2, %p1038_p1 }
 0x346   :  { %p1041_p4 = pnand %p1040_p3, %p1034_p0 }
 0x408   :  { %v629_v28 = vpop.f32.mrb[4].mxu1 }
 0x409   :  { %v630_v29 = vadd.f32 %v713_v0, %v629_v28  ;;  %v807_v30 = vpop.f32.mrb[5].mxu1 }
 0x40a   :  { %v632_v31 = vpop.f32.mrb[6].mxu1 }
 0x40b   :  { %636 = vst [vmem:[#allocation13] sm:$0xff] %v630_v29  ;;  %v633_v32 = vadd.f32 %v713_v0, %v632_v31  ;;  %v808_v33 = vpop.f32.mrb[7].mxu1 }
 0x40d   :  { %637 = vst [vmem:[#allocation13 + $0x8] sm:$0xff] %v633_v32 }
 0x40e   :  { %1044 = shalt.err (!%p1041_p4)
}
 0x40f   :  { %s1045_s1 = scalar_lea.hbm %s1313_s10, 256 }
 0x410   :  { %p1046_p5 = scmp.ne.s32.totalorder %s1313_s10, %s1045_s1  ;;  %p1049_p6 = scmp.lt.u32.totalorder %s1045_s1, %s1313_s10 }
 0x412   :  { %p1051_p7 = pnand %p1049_p6, %p1046_p5 }
 0x414   :  { %1054 = shalt.err (!%p1051_p7)
}
 0x415   :  { %653 = dma.vmem_to_hbm [thread:$0]  %s648_s17, 256, %s1313_s10, [#allocation4], %s1068_s27, %s1068_s27, %s1069_s28  }
 0x416   :  { %1063 = dma.done.wait [#allocation4], 256  }
 0x417   :  { %1064 = vsyncadd [#allocation4], 4294967040 }
 0x418   :  { %1065 = dma.done.wait [#allocation15], 512  }
 0x419   :  { %1066 = vsyncadd [#allocation15], 4294966784 }
 0x41a   :  { %672 = vsyncpa [#allocation3], 1 }
 0x41b   :  { %673 = vsyncpa [#allocation6], 1 }
 0x41c   :  { %674 = vsyncpa [#allocation9], 1 }
 0x41d   :  { %675 = vsyncpa [#allocation12], 1 }
 0x41e   :  { %676 = vsyncpa [#allocation4], 1 }
 0x41f   :  { %677 = vsyncpa [#allocation15], 1 }

</bundles_post_ra>
